<compile_context>
chip_gen: v7x
topology: tpu7x:2x2x1
jax: 0.10.0
libtpu: 0.0.40
codegen_flags: <defaults>
</compile_context>

<pallas_src>
import numpy as np

import jax
import jax.numpy as jnp
from jax.experimental import pallas as pl
from jax.experimental.pallas import tpu as pltpu

INPUT_SIZE = 300
OUTPUT_SIZE = 4
NB_LAYERS = 3
EPS = 1e-5
TB_MAX = 1024  # max batch-tile rows

# Layer dimension schedules (match np.linspace(..., dtype=int) of the module).
_enc = np.flip(np.linspace(OUTPUT_SIZE, INPUT_SIZE, NB_LAYERS + 1, dtype=int))
_dec = np.linspace(OUTPUT_SIZE, INPUT_SIZE, NB_LAYERS + 1, dtype=int)
ENC_REAL = [int(d) for d in _enc]   # [300, 201, 102, 4]
DEC_REAL = [int(d) for d in _dec]   # [4, 102, 201, 300]


def _pad_dim(d):
    # Round every feature dim up to a lane multiple (lane-dense loads/stores,
    # clean (16,128) bf16 weight tiles, 128-multiple MXU K/N).
    return ((d + 127) // 128) * 128


IN_PAD = _pad_dim(INPUT_SIZE)       # 384
LATENT_PAD = _pad_dim(OUTPUT_SIZE)  # 128

# (real_in, padded_in, real_out, padded_out) for the 6 LayerNorm->Linear layers.
LAYER_DIMS = []
for _dims in (ENC_REAL, DEC_REAL):
    for _li in range(NB_LAYERS):
        _r_in, _r_out = _dims[_li], _dims[_li + 1]
        LAYER_DIMS.append((_r_in, _pad_dim(_r_in), _r_out, _pad_dim(_r_out)))
NB_TOTAL = len(LAYER_DIMS)          # 6

# Static offsets of each layer's bias inside the concatenated bias slab.
BIAS_OFFSETS = []
_off = 0
for _, _, _, _p_out in LAYER_DIMS:
    BIAS_OFFSETS.append(_off)
    _off += _p_out
BIAS_TOTAL = _off                   # 1280 (all offsets are multiples of 128)


def _ln_linear(h, w, bias, r_in, p_in):
    """f32 LayerNorm over the first r_in features of h (padded cols of h are exactly
    zero by construction; their diff^2 contribution == mu^2 each, corrected exactly),
    then bf16 matmul (MXU) with f32 accumulation + folded bias."""
    inv_n = 1.0 / r_in
    mu = jnp.sum(h, axis=-1, keepdims=True) * inv_n
    diff = h - mu
    ssq = jnp.sum(diff * diff, axis=-1, keepdims=True)
    var = (ssq - float(p_in - r_in) * (mu * mu)) * inv_n
    hn = diff * jax.lax.rsqrt(var + EPS)
    # Padded hn columns (= -mu*rstd) hit zero weight rows -> contribute exactly 0.
    z = jnp.dot(hn.astype(jnp.bfloat16), w, preferred_element_type=jnp.float32)
    return z + bias


def ae_kernel(x_ref, w0_ref, w1_ref, w2_ref, w3_ref, w4_ref, w5_ref,
              bias_ref, decoded_ref, raw_latent_ref):
    w_refs = (w0_ref, w1_ref, w2_ref, w3_ref, w4_ref, w5_ref)
    h = x_ref[...]
    for li, (r_in, p_in, r_out, p_out) in enumerate(LAYER_DIMS):
        off = BIAS_OFFSETS[li]
        bias = bias_ref[:, off:off + p_out]          # static, 128-aligned slice
        z = _ln_linear(h, w_refs[li][...], bias, r_in, p_in)
        if li == NB_LAYERS - 1:                      # last encoder layer
            raw_latent_ref[...] = z                  # pre-activation latent (clone)
        h = jnp.maximum(z, 0.0) if li < NB_TOTAL - 1 else z
    decoded_ref[...] = h


def init_params(key):
    """Unpadded f32 parameters (PyTorch-Linear-style uniform init bounds)."""
    params = []
    for dims in (ENC_REAL, DEC_REAL):
        for li in range(NB_LAYERS):
            d_in, d_out = dims[li], dims[li + 1]
            key, k_w, k_b = jax.random.split(key, 3)
            bound = 1.0 / jnp.sqrt(jnp.float32(d_in))
            gamma = jnp.ones((1, d_in), jnp.float32)
            beta = jnp.zeros((1, d_in), jnp.float32)
            w = jax.random.uniform(k_w, (d_in, d_out), jnp.float32, -bound, bound)
            b = jax.random.uniform(k_b, (1, d_out), jnp.float32, -bound, bound)
            params.extend([gamma, beta, w, b])
    return params


def pack_params(params):
    """Fold gamma/beta into the weights/biases (in f32), zero-pad all dims to lane
    multiples, cast weights to bf16, and concatenate the biases into one slab."""
    weights = []
    bias_cols = []
    for li, (r_in, p_in, r_out, p_out) in enumerate(LAYER_DIMS):
        g, be, w, bi = params[4 * li:4 * li + 4]
        w_fold = g.reshape(-1, 1) * w                # fold gamma (f32, pre-cast)
        b_fold = bi + be @ w                         # fold beta
        wp = jnp.zeros((p_in, p_out), jnp.float32).at[:r_in, :r_out].set(w_fold)
        bp_ = jnp.zeros((1, p_out), jnp.float32).at[:, :r_out].set(b_fold)
        weights.append(wp.astype(jnp.bfloat16))
        bias_cols.append(bp_)
    bias_slab = jnp.concatenate(bias_cols, axis=1)   # (1, BIAS_TOTAL)
    return weights, bias_slab


@jax.jit
def ae_forward(x, weights, bias_slab):
    b = x.shape[0]
    b8 = ((b + 7) // 8) * 8
    if b8 <= 8:
        tb = 8
    else:
        # Keep >= 2 grid steps when possible so both v7x TensorCores get work.
        tb = min(TB_MAX, max(8, (b8 // 2) // 8 * 8))
    bp = ((b8 + tb - 1) // tb) * tb                  # padded batch
    x_p = jnp.pad(x, ((0, bp - b), (0, IN_PAD - INPUT_SIZE)))
    grid = (bp // tb,)

    x_spec = pl.BlockSpec((tb, IN_PAD), lambda i: (i, 0))
    # Constant index_map -> weights/bias slab stay resident in VMEM across steps.
    w_specs = [pl.BlockSpec(w.shape, lambda i: (0, 0)) for w in weights]
    bias_spec = pl.BlockSpec((1, BIAS_TOTAL), lambda i: (0, 0))

    out_shapes = (
        jax.ShapeDtypeStruct((bp, IN_PAD), jnp.float32),       # decoded (padded)
        jax.ShapeDtypeStruct((bp, LATENT_PAD), jnp.float32),   # raw_LatentAE (padded)
    )
    out_specs = (
        pl.BlockSpec((tb, IN_PAD), lambda i: (i, 0)),
        pl.BlockSpec((tb, LATENT_PAD), lambda i: (i, 0)),
    )

    flops = 2 * bp * sum(p_in * p_out for _, p_in, _, p_out in LAYER_DIMS)
    bytes_accessed = (
        bp * IN_PAD * 4
        + sum(w.size * w.dtype.itemsize for w in weights)
        + bias_slab.size * bias_slab.dtype.itemsize
        + bp * (IN_PAD + LATENT_PAD) * 4
    )

    decoded, raw = pl.pallas_call(
        ae_kernel,
        out_shape=out_shapes,
        grid=grid,
        in_specs=[x_spec] + w_specs + [bias_spec],
        out_specs=out_specs,
        compiler_params=pltpu.CompilerParams(
            dimension_semantics=("parallel",),
            vmem_limit_bytes=32 * 1024 * 1024),
        cost_estimate=pl.CostEstimate(
            flops=int(flops), transcendentals=int(NB_TOTAL * bp),
            bytes_accessed=int(bytes_accessed)),
    )(x_p, *weights, bias_slab)

    raw_latent = raw[:b, :OUTPUT_SIZE]
    encoded = jnp.maximum(raw_latent, 0.0)           # last encoder ReLU (wrapper-side)
    return decoded[:b, :INPUT_SIZE], raw_latent, encoded


def ae_forward_ref(x, params):
    """Pure-JAX reference (unpadded), mirroring the kernel's bf16 matmul path."""
    h = x
    raw = None
    for li in range(NB_TOTAL):
        g, be, w, bi = params[4 * li:4 * li + 4]
        mu = jnp.mean(h, axis=-1, keepdims=True)
        var = jnp.mean(jnp.square(h - mu), axis=-1, keepdims=True)
        hn = (h - mu) * jax.lax.rsqrt(var + EPS) * g + be
        z = jnp.dot(hn.astype(jnp.bfloat16), w.astype(jnp.bfloat16),
                    preferred_element_type=jnp.float32) + bi
        if li == NB_LAYERS - 1:
            raw = z
        h = jnp.maximum(z, 0.0) if li < NB_TOTAL - 1 else z
    encoded = jnp.maximum(raw, 0.0)
    return h, raw, encoded


if __name__ == "__main__":
    key = jax.random.PRNGKey(0)
    k_x, k_p = jax.random.split(key)

    batch = 8
    x = jax.random.normal(k_x, (batch, INPUT_SIZE), jnp.float32)
    params = init_params(k_p)
    weights, bias_slab = pack_params(params)

    decoded, raw_latent, encoded = ae_forward(x, weights, bias_slab)
    jax.block_until_ready((decoded, raw_latent, encoded))

    # Sanity check against pure-JAX reference (same bf16 weight quantization).
    d_ref, r_ref, e_ref = ae_forward_ref(x, params)
    assert decoded.shape == (batch, INPUT_SIZE)
    assert raw_latent.shape == (batch, OUTPUT_SIZE)
    assert encoded.shape == (batch, OUTPUT_SIZE)
    assert jnp.allclose(decoded, d_ref, atol=1e-2, rtol=1e-2)
    assert jnp.allclose(raw_latent, r_ref, atol=1e-2, rtol=1e-2)
    assert jnp.allclose(encoded, e_ref, atol=1e-2, rtol=1e-2)

    print("KERNEL_OK")
</pallas_src>

<mosaic_0001>
module attributes {stable_mosaic.version = 11 : i64} {
  func.func @ae_kernel(%arg0: i32, %arg1: memref<8x384xf32, #tpu.memory_space<vmem>>, %arg2: memref<384x256xbf16, #tpu.memory_space<vmem>>, %arg3: memref<256x128xbf16, #tpu.memory_space<vmem>>, %arg4: memref<128x128xbf16, #tpu.memory_space<vmem>>, %arg5: memref<128x128xbf16, #tpu.memory_space<vmem>>, %arg6: memref<128x256xbf16, #tpu.memory_space<vmem>>, %arg7: memref<256x384xbf16, #tpu.memory_space<vmem>>, %arg8: memref<1x1280xf32, #tpu.memory_space<vmem>>, %arg9: memref<8x384xf32, #tpu.memory_space<vmem>>, %arg10: memref<8x128xf32, #tpu.memory_space<vmem>>) attributes {dimension_semantics = [#tpu.dimension_semantics<parallel>], iteration_bounds = array<i64: 1>, scalar_prefetch = 0 : i64, scratch_operands = 0 : i64, tpu.core_type = #tpu.core_type<tc>, window_params = [{transform_indices = @transform_0, window_bounds = array<i64: 8, 384>}, {pipeline_mode = #tpu.pipeline_mode<synchronous>, transform_indices = @transform_1, window_bounds = array<i64: 384, 256>}, {pipeline_mode = #tpu.pipeline_mode<synchronous>, transform_indices = @transform_2, window_bounds = array<i64: 256, 128>}, {pipeline_mode = #tpu.pipeline_mode<synchronous>, transform_indices = @transform_3, window_bounds = array<i64: 128, 128>}, {pipeline_mode = #tpu.pipeline_mode<synchronous>, transform_indices = @transform_4, window_bounds = array<i64: 128, 128>}, {pipeline_mode = #tpu.pipeline_mode<synchronous>, transform_indices = @transform_5, window_bounds = array<i64: 128, 256>}, {pipeline_mode = #tpu.pipeline_mode<synchronous>, transform_indices = @transform_6, window_bounds = array<i64: 256, 384>}, {pipeline_mode = #tpu.pipeline_mode<synchronous>, transform_indices = @transform_7, window_bounds = array<i64: 1, 1280>}, {transform_indices = @transform_8, window_bounds = array<i64: 8, 384>}, {transform_indices = @transform_9, window_bounds = array<i64: 8, 128>}]} {
    %c0 = arith.constant 0 : index
    %c0_0 = arith.constant 0 : index
    %0 = vector.load %arg1[%c0, %c0_0] : memref<8x384xf32, #tpu.memory_space<vmem>>, vector<8x384xf32>
    %c0_1 = arith.constant 0 : index
    %c0_2 = arith.constant 0 : index
    %1 = vector.load %arg8[%c0_1, %c0_2] : memref<1x1280xf32, #tpu.memory_space<vmem>>, vector<1x256xf32>
    %c0_3 = arith.constant 0 : index
    %c0_4 = arith.constant 0 : index
    %2 = vector.load %arg2[%c0_3, %c0_4] : memref<384x256xbf16, #tpu.memory_space<vmem>>, vector<384x256xbf16>
    %cst = arith.constant dense<0.000000e+00> : vector<8xf32>
    %3 = vector.multi_reduction <add>, %0, %cst [1] : vector<8x384xf32> to vector<8xf32>
    %4 = vector.shape_cast %3 : vector<8xf32> to vector<8x1xf32>
    %cst_5 = arith.constant 0.00333333341 : f32
    %5 = vector.broadcast %cst_5 : f32 to vector<8x1xf32>
    %6 = arith.mulf %4, %5 : vector<8x1xf32>
    %7 = vector.broadcast %6 : vector<8x1xf32> to vector<8x384xf32>
    %8 = arith.subf %0, %7 : vector<8x384xf32>
    %9 = arith.mulf %8, %8 : vector<8x384xf32>
    %cst_6 = arith.constant dense<0.000000e+00> : vector<8xf32>
    %10 = vector.multi_reduction <add>, %9, %cst_6 [1] : vector<8x384xf32> to vector<8xf32>
    %11 = vector.shape_cast %10 : vector<8xf32> to vector<8x1xf32>
    %12 = arith.mulf %6, %6 : vector<8x1xf32>
    %cst_7 = arith.constant 8.400000e+01 : f32
    %13 = vector.broadcast %cst_7 : f32 to vector<8x1xf32>
    %14 = arith.mulf %13, %12 : vector<8x1xf32>
    %15 = arith.subf %11, %14 : vector<8x1xf32>
    %cst_8 = arith.constant 0.00333333341 : f32
    %16 = vector.broadcast %cst_8 : f32 to vector<8x1xf32>
    %17 = arith.mulf %15, %16 : vector<8x1xf32>
    %cst_9 = arith.constant 9.99999974E-6 : f32
    %18 = vector.broadcast %cst_9 : f32 to vector<8x1xf32>
    %19 = arith.addf %17, %18 : vector<8x1xf32>
    %20 = math.rsqrt %19 : vector<8x1xf32>
    %21 = vector.broadcast %20 : vector<8x1xf32> to vector<8x384xf32>
    %22 = arith.mulf %8, %21 : vector<8x384xf32>
    %23 = arith.truncf %22 : vector<8x384xf32> to vector<8x384xbf16>
    %cst_10 = arith.constant dense<0.000000e+00> : vector<8x256xf32>
    %24 = tpu.matmul %23, %2, %cst_10 {dimension_numbers = #tpu.dot_dimension_numbers<[1], [0], [0], [1], [0, 0, 1, 1], [], []>} : vector<8x384xbf16>, vector<384x256xbf16>, vector<8x256xf32> -> vector<8x256xf32>
    %25 = vector.broadcast %1 : vector<1x256xf32> to vector<8x256xf32>
    %26 = arith.addf %24, %25 : vector<8x256xf32>
    %cst_11 = arith.constant 0.000000e+00 : f32
    %27 = vector.broadcast %cst_11 : f32 to vector<8x256xf32>
    %28 = arith.maximumf %26, %27 : vector<8x256xf32>
    %c0_12 = arith.constant 0 : index
    %c256 = arith.constant 256 : index
    %29 = vector.load %arg8[%c0_12, %c256] : memref<1x1280xf32, #tpu.memory_space<vmem>>, vector<1x128xf32>
    %c0_13 = arith.constant 0 : index
    %c0_14 = arith.constant 0 : index
    %30 = vector.load %arg3[%c0_13, %c0_14] : memref<256x128xbf16, #tpu.memory_space<vmem>>, vector<256x128xbf16>
    %cst_15 = arith.constant dense<0.000000e+00> : vector<8xf32>
    %31 = vector.multi_reduction <add>, %28, %cst_15 [1] : vector<8x256xf32> to vector<8xf32>
    %32 = vector.shape_cast %31 : vector<8xf32> to vector<8x1xf32>
    %cst_16 = arith.constant 0.00497512426 : f32
    %33 = vector.broadcast %cst_16 : f32 to vector<8x1xf32>
    %34 = arith.mulf %32, %33 : vector<8x1xf32>
    %35 = vector.broadcast %34 : vector<8x1xf32> to vector<8x256xf32>
    %36 = arith.subf %28, %35 : vector<8x256xf32>
    %37 = arith.mulf %36, %36 : vector<8x256xf32>
    %cst_17 = arith.constant dense<0.000000e+00> : vector<8xf32>
    %38 = vector.multi_reduction <add>, %37, %cst_17 [1] : vector<8x256xf32> to vector<8xf32>
    %39 = vector.shape_cast %38 : vector<8xf32> to vector<8x1xf32>
    %40 = arith.mulf %34, %34 : vector<8x1xf32>
    %cst_18 = arith.constant 5.500000e+01 : f32
    %41 = vector.broadcast %cst_18 : f32 to vector<8x1xf32>
    %42 = arith.mulf %41, %40 : vector<8x1xf32>
    %43 = arith.subf %39, %42 : vector<8x1xf32>
    %cst_19 = arith.constant 0.00497512426 : f32
    %44 = vector.broadcast %cst_19 : f32 to vector<8x1xf32>
    %45 = arith.mulf %43, %44 : vector<8x1xf32>
    %cst_20 = arith.constant 9.99999974E-6 : f32
    %46 = vector.broadcast %cst_20 : f32 to vector<8x1xf32>
    %47 = arith.addf %45, %46 : vector<8x1xf32>
    %48 = math.rsqrt %47 : vector<8x1xf32>
    %49 = vector.broadcast %48 : vector<8x1xf32> to vector<8x256xf32>
    %50 = arith.mulf %36, %49 : vector<8x256xf32>
    %51 = arith.truncf %50 : vector<8x256xf32> to vector<8x256xbf16>
    %cst_21 = arith.constant dense<0.000000e+00> : vector<8x128xf32>
    %52 = tpu.matmul %51, %30, %cst_21 {dimension_numbers = #tpu.dot_dimension_numbers<[1], [0], [0], [1], [0, 0, 1, 1], [], []>} : vector<8x256xbf16>, vector<256x128xbf16>, vector<8x128xf32> -> vector<8x128xf32>
    %53 = vector.broadcast %29 : vector<1x128xf32> to vector<8x128xf32>
    %54 = arith.addf %52, %53 : vector<8x128xf32>
    %cst_22 = arith.constant 0.000000e+00 : f32
    %55 = vector.broadcast %cst_22 : f32 to vector<8x128xf32>
    %56 = arith.maximumf %54, %55 : vector<8x128xf32>
    %c0_23 = arith.constant 0 : index
    %c384 = arith.constant 384 : index
    %57 = vector.load %arg8[%c0_23, %c384] : memref<1x1280xf32, #tpu.memory_space<vmem>>, vector<1x128xf32>
    %c0_24 = arith.constant 0 : index
    %c0_25 = arith.constant 0 : index
    %58 = vector.load %arg4[%c0_24, %c0_25] : memref<128x128xbf16, #tpu.memory_space<vmem>>, vector<128x128xbf16>
    %cst_26 = arith.constant dense<0.000000e+00> : vector<8xf32>
    %59 = vector.multi_reduction <add>, %56, %cst_26 [1] : vector<8x128xf32> to vector<8xf32>
    %60 = vector.shape_cast %59 : vector<8xf32> to vector<8x1xf32>
    %cst_27 = arith.constant 0.00980392192 : f32
    %61 = vector.broadcast %cst_27 : f32 to vector<8x1xf32>
    %62 = arith.mulf %60, %61 : vector<8x1xf32>
    %63 = vector.broadcast %62 : vector<8x1xf32> to vector<8x128xf32>
    %64 = arith.subf %56, %63 : vector<8x128xf32>
    %65 = arith.mulf %64, %64 : vector<8x128xf32>
    %cst_28 = arith.constant dense<0.000000e+00> : vector<8xf32>
    %66 = vector.multi_reduction <add>, %65, %cst_28 [1] : vector<8x128xf32> to vector<8xf32>
    %67 = vector.shape_cast %66 : vector<8xf32> to vector<8x1xf32>
    %68 = arith.mulf %62, %62 : vector<8x1xf32>
    %cst_29 = arith.constant 2.600000e+01 : f32
    %69 = vector.broadcast %cst_29 : f32 to vector<8x1xf32>
    %70 = arith.mulf %69, %68 : vector<8x1xf32>
    %71 = arith.subf %67, %70 : vector<8x1xf32>
    %cst_30 = arith.constant 0.00980392192 : f32
    %72 = vector.broadcast %cst_30 : f32 to vector<8x1xf32>
    %73 = arith.mulf %71, %72 : vector<8x1xf32>
    %cst_31 = arith.constant 9.99999974E-6 : f32
    %74 = vector.broadcast %cst_31 : f32 to vector<8x1xf32>
    %75 = arith.addf %73, %74 : vector<8x1xf32>
    %76 = math.rsqrt %75 : vector<8x1xf32>
    %77 = vector.broadcast %76 : vector<8x1xf32> to vector<8x128xf32>
    %78 = arith.mulf %64, %77 : vector<8x128xf32>
    %79 = arith.truncf %78 : vector<8x128xf32> to vector<8x128xbf16>
    %cst_32 = arith.constant dense<0.000000e+00> : vector<8x128xf32>
    %80 = tpu.matmul %79, %58, %cst_32 {dimension_numbers = #tpu.dot_dimension_numbers<[1], [0], [0], [1], [0, 0, 1, 1], [], []>} : vector<8x128xbf16>, vector<128x128xbf16>, vector<8x128xf32> -> vector<8x128xf32>
    %81 = vector.broadcast %57 : vector<1x128xf32> to vector<8x128xf32>
    %82 = arith.addf %80, %81 : vector<8x128xf32>
    %c0_33 = arith.constant 0 : index
    %c0_34 = arith.constant 0 : index
    %83 = vector.load %arg10[%c0_33, %c0_34] : memref<8x128xf32, #tpu.memory_space<vmem>>, vector<8x128xf32>
    tpu.vector_store %arg10[%c0_33, %c0_34], %82 {strides = array<i32>} : memref<8x128xf32, #tpu.memory_space<vmem>>, vector<8x128xf32>,
    %cst_35 = arith.constant 0.000000e+00 : f32
    %84 = vector.broadcast %cst_35 : f32 to vector<8x128xf32>
    %85 = arith.maximumf %82, %84 : vector<8x128xf32>
    %c0_36 = arith.constant 0 : index
    %c512 = arith.constant 512 : index
    %86 = vector.load %arg8[%c0_36, %c512] : memref<1x1280xf32, #tpu.memory_space<vmem>>, vector<1x128xf32>
    %c0_37 = arith.constant 0 : index
    %c0_38 = arith.constant 0 : index
    %87 = vector.load %arg5[%c0_37, %c0_38] : memref<128x128xbf16, #tpu.memory_space<vmem>>, vector<128x128xbf16>
    %cst_39 = arith.constant dense<0.000000e+00> : vector<8xf32>
    %88 = vector.multi_reduction <add>, %85, %cst_39 [1] : vector<8x128xf32> to vector<8xf32>
    %89 = vector.shape_cast %88 : vector<8xf32> to vector<8x1xf32>
    %cst_40 = arith.constant 2.500000e-01 : f32
    %90 = vector.broadcast %cst_40 : f32 to vector<8x1xf32>
    %91 = arith.mulf %89, %90 : vector<8x1xf32>
    %92 = vector.broadcast %91 : vector<8x1xf32> to vector<8x128xf32>
    %93 = arith.subf %85, %92 : vector<8x128xf32>
    %94 = arith.mulf %93, %93 : vector<8x128xf32>
    %cst_41 = arith.constant dense<0.000000e+00> : vector<8xf32>
    %95 = vector.multi_reduction <add>, %94, %cst_41 [1] : vector<8x128xf32> to vector<8xf32>
    %96 = vector.shape_cast %95 : vector<8xf32> to vector<8x1xf32>
    %97 = arith.mulf %91, %91 : vector<8x1xf32>
    %cst_42 = arith.constant 1.240000e+02 : f32
    %98 = vector.broadcast %cst_42 : f32 to vector<8x1xf32>
    %99 = arith.mulf %98, %97 : vector<8x1xf32>
    %100 = arith.subf %96, %99 : vector<8x1xf32>
    %cst_43 = arith.constant 2.500000e-01 : f32
    %101 = vector.broadcast %cst_43 : f32 to vector<8x1xf32>
    %102 = arith.mulf %100, %101 : vector<8x1xf32>
    %cst_44 = arith.constant 9.99999974E-6 : f32
    %103 = vector.broadcast %cst_44 : f32 to vector<8x1xf32>
    %104 = arith.addf %102, %103 : vector<8x1xf32>
    %105 = math.rsqrt %104 : vector<8x1xf32>
    %106 = vector.broadcast %105 : vector<8x1xf32> to vector<8x128xf32>
    %107 = arith.mulf %93, %106 : vector<8x128xf32>
    %108 = arith.truncf %107 : vector<8x128xf32> to vector<8x128xbf16>
    %cst_45 = arith.constant dense<0.000000e+00> : vector<8x128xf32>
    %109 = tpu.matmul %108, %87, %cst_45 {dimension_numbers = #tpu.dot_dimension_numbers<[1], [0], [0], [1], [0, 0, 1, 1], [], []>} : vector<8x128xbf16>, vector<128x128xbf16>, vector<8x128xf32> -> vector<8x128xf32>
    %110 = vector.broadcast %86 : vector<1x128xf32> to vector<8x128xf32>
    %111 = arith.addf %109, %110 : vector<8x128xf32>
    %cst_46 = arith.constant 0.000000e+00 : f32
    %112 = vector.broadcast %cst_46 : f32 to vector<8x128xf32>
    %113 = arith.maximumf %111, %112 : vector<8x128xf32>
    %c0_47 = arith.constant 0 : index
    %c640 = arith.constant 640 : index
    %114 = vector.load %arg8[%c0_47, %c640] : memref<1x1280xf32, #tpu.memory_space<vmem>>, vector<1x256xf32>
    %c0_48 = arith.constant 0 : index
    %c0_49 = arith.constant 0 : index
    %115 = vector.load %arg6[%c0_48, %c0_49] : memref<128x256xbf16, #tpu.memory_space<vmem>>, vector<128x256xbf16>
    %cst_50 = arith.constant dense<0.000000e+00> : vector<8xf32>
    %116 = vector.multi_reduction <add>, %113, %cst_50 [1] : vector<8x128xf32> to vector<8xf32>
    %117 = vector.shape_cast %116 : vector<8xf32> to vector<8x1xf32>
    %cst_51 = arith.constant 0.00980392192 : f32
    %118 = vector.broadcast %cst_51 : f32 to vector<8x1xf32>
    %119 = arith.mulf %117, %118 : vector<8x1xf32>
    %120 = vector.broadcast %119 : vector<8x1xf32> to vector<8x128xf32>
    %121 = arith.subf %113, %120 : vector<8x128xf32>
    %122 = arith.mulf %121, %121 : vector<8x128xf32>
    %cst_52 = arith.constant dense<0.000000e+00> : vector<8xf32>
    %123 = vector.multi_reduction <add>, %122, %cst_52 [1] : vector<8x128xf32> to vector<8xf32>
    %124 = vector.shape_cast %123 : vector<8xf32> to vector<8x1xf32>
    %125 = arith.mulf %119, %119 : vector<8x1xf32>
    %cst_53 = arith.constant 2.600000e+01 : f32
    %126 = vector.broadcast %cst_53 : f32 to vector<8x1xf32>
    %127 = arith.mulf %126, %125 : vector<8x1xf32>
    %128 = arith.subf %124, %127 : vector<8x1xf32>
    %cst_54 = arith.constant 0.00980392192 : f32
    %129 = vector.broadcast %cst_54 : f32 to vector<8x1xf32>
    %130 = arith.mulf %128, %129 : vector<8x1xf32>
    %cst_55 = arith.constant 9.99999974E-6 : f32
    %131 = vector.broadcast %cst_55 : f32 to vector<8x1xf32>
    %132 = arith.addf %130, %131 : vector<8x1xf32>
    %133 = math.rsqrt %132 : vector<8x1xf32>
    %134 = vector.broadcast %133 : vector<8x1xf32> to vector<8x128xf32>
    %135 = arith.mulf %121, %134 : vector<8x128xf32>
    %136 = arith.truncf %135 : vector<8x128xf32> to vector<8x128xbf16>
    %cst_56 = arith.constant dense<0.000000e+00> : vector<8x256xf32>
    %137 = tpu.matmul %136, %115, %cst_56 {dimension_numbers = #tpu.dot_dimension_numbers<[1], [0], [0], [1], [0, 0, 1, 1], [], []>} : vector<8x128xbf16>, vector<128x256xbf16>, vector<8x256xf32> -> vector<8x256xf32>
    %138 = vector.broadcast %114 : vector<1x256xf32> to vector<8x256xf32>
    %139 = arith.addf %137, %138 : vector<8x256xf32>
    %cst_57 = arith.constant 0.000000e+00 : f32
    %140 = vector.broadcast %cst_57 : f32 to vector<8x256xf32>
    %141 = arith.maximumf %139, %140 : vector<8x256xf32>
    %c0_58 = arith.constant 0 : index
    %c896 = arith.constant 896 : index
    %142 = vector.load %arg8[%c0_58, %c896] : memref<1x1280xf32, #tpu.memory_space<vmem>>, vector<1x384xf32>
    %c0_59 = arith.constant 0 : index
    %c0_60 = arith.constant 0 : index
    %143 = vector.load %arg7[%c0_59, %c0_60] : memref<256x384xbf16, #tpu.memory_space<vmem>>, vector<256x384xbf16>
    %cst_61 = arith.constant dense<0.000000e+00> : vector<8xf32>
    %144 = vector.multi_reduction <add>, %141, %cst_61 [1] : vector<8x256xf32> to vector<8xf32>
    %145 = vector.shape_cast %144 : vector<8xf32> to vector<8x1xf32>
    %cst_62 = arith.constant 0.00497512426 : f32
    %146 = vector.broadcast %cst_62 : f32 to vector<8x1xf32>
    %147 = arith.mulf %145, %146 : vector<8x1xf32>
    %148 = vector.broadcast %147 : vector<8x1xf32> to vector<8x256xf32>
    %149 = arith.subf %141, %148 : vector<8x256xf32>
    %150 = arith.mulf %149, %149 : vector<8x256xf32>
    %cst_63 = arith.constant dense<0.000000e+00> : vector<8xf32>
    %151 = vector.multi_reduction <add>, %150, %cst_63 [1] : vector<8x256xf32> to vector<8xf32>
    %152 = vector.shape_cast %151 : vector<8xf32> to vector<8x1xf32>
    %153 = arith.mulf %147, %147 : vector<8x1xf32>
    %cst_64 = arith.constant 5.500000e+01 : f32
    %154 = vector.broadcast %cst_64 : f32 to vector<8x1xf32>
    %155 = arith.mulf %154, %153 : vector<8x1xf32>
    %156 = arith.subf %152, %155 : vector<8x1xf32>
    %cst_65 = arith.constant 0.00497512426 : f32
    %157 = vector.broadcast %cst_65 : f32 to vector<8x1xf32>
    %158 = arith.mulf %156, %157 : vector<8x1xf32>
    %cst_66 = arith.constant 9.99999974E-6 : f32
    %159 = vector.broadcast %cst_66 : f32 to vector<8x1xf32>
    %160 = arith.addf %158, %159 : vector<8x1xf32>
    %161 = math.rsqrt %160 : vector<8x1xf32>
    %162 = vector.broadcast %161 : vector<8x1xf32> to vector<8x256xf32>
    %163 = arith.mulf %149, %162 : vector<8x256xf32>
    %164 = arith.truncf %163 : vector<8x256xf32> to vector<8x256xbf16>
    %cst_67 = arith.constant dense<0.000000e+00> : vector<8x384xf32>
    %165 = tpu.matmul %164, %143, %cst_67 {dimension_numbers = #tpu.dot_dimension_numbers<[1], [0], [0], [1], [0, 0, 1, 1], [], []>} : vector<8x256xbf16>, vector<256x384xbf16>, vector<8x384xf32> -> vector<8x384xf32>
    %166 = vector.broadcast %142 : vector<1x384xf32> to vector<8x384xf32>
    %167 = arith.addf %165, %166 : vector<8x384xf32>
    %c0_68 = arith.constant 0 : index
    %c0_69 = arith.constant 0 : index
    %168 = vector.load %arg9[%c0_68, %c0_69] : memref<8x384xf32, #tpu.memory_space<vmem>>, vector<8x384xf32>
    tpu.vector_store %arg9[%c0_68, %c0_69], %167 {strides = array<i32>} : memref<8x384xf32, #tpu.memory_space<vmem>>, vector<8x384xf32>,
    return
  }
  func.func @transform_0(%arg0: i32) -> (i32, i32) {
    %c0_i32 = arith.constant 0 : i32
    %c0_i32_0 = arith.constant 0 : i32
    return %arg0, %c0_i32 : i32, i32
  }
  func.func @transform_1(%arg0: i32) -> (i32, i32) {
    %c0_i32 = arith.constant 0 : i32
    %c0_i32_0 = arith.constant 0 : i32
    %c0_i32_1 = arith.constant 0 : i32
    return %c0_i32, %c0_i32_0 : i32, i32
  }
  func.func @transform_2(%arg0: i32) -> (i32, i32) {
    %c0_i32 = arith.constant 0 : i32
    %c0_i32_0 = arith.constant 0 : i32
    %c0_i32_1 = arith.constant 0 : i32
    return %c0_i32, %c0_i32_0 : i32, i32
  }
  func.func @transform_3(%arg0: i32) -> (i32, i32) {
    %c0_i32 = arith.constant 0 : i32
    %c0_i32_0 = arith.constant 0 : i32
    %c0_i32_1 = arith.constant 0 : i32
    return %c0_i32, %c0_i32_0 : i32, i32
  }
  func.func @transform_4(%arg0: i32) -> (i32, i32) {
    %c0_i32 = arith.constant 0 : i32
    %c0_i32_0 = arith.constant 0 : i32
    %c0_i32_1 = arith.constant 0 : i32
    return %c0_i32, %c0_i32_0 : i32, i32
  }
  func.func @transform_5(%arg0: i32) -> (i32, i32) {
    %c0_i32 = arith.constant 0 : i32
    %c0_i32_0 = arith.constant 0 : i32
    %c0_i32_1 = arith.constant 0 : i32
    return %c0_i32, %c0_i32_0 : i32, i32
  }
  func.func @transform_6(%arg0: i32) -> (i32, i32) {
    %c0_i32 = arith.constant 0 : i32
    %c0_i32_0 = arith.constant 0 : i32
    %c0_i32_1 = arith.constant 0 : i32
    return %c0_i32, %c0_i32_0 : i32, i32
  }
  func.func @transform_7(%arg0: i32) -> (i32, i32) {
    %c0_i32 = arith.constant 0 : i32
    %c0_i32_0 = arith.constant 0 : i32
    %c0_i32_1 = arith.constant 0 : i32
    return %c0_i32, %c0_i32_0 : i32, i32
  }
  func.func @transform_8(%arg0: i32) -> (i32, i32) {
    %c0_i32 = arith.constant 0 : i32
    %c0_i32_0 = arith.constant 0 : i32
    return %arg0, %c0_i32 : i32, i32
  }
  func.func @transform_9(%arg0: i32) -> (i32, i32) {
    %c0_i32 = arith.constant 0 : i32
    %c0_i32_0 = arith.constant 0 : i32
    return %arg0, %c0_i32 : i32, i32
  }
}

</mosaic_0001>

<bundles_post_ra>
// kernel: ae_forward.1
= control target key start
LH: loop header
LB: loop body
LE: loop exit
PB: predicated region body
PF: predicated region fallthrough
CT: control target
= control target key end

     0   :  { %15 = vsyncpa [#allocation3], 0  ;;  %s2457_s0 = inlined_call_operand.vmem [shape: f32[8,384], index: 0, kind: input, shape index: {}]   ;;  %s2458_s1 = inlined_call_operand.hbm [shape: bf16[384,256], index: 1, kind: input, shape index: {}]   ;;  %s2459_s2 = inlined_call_operand.hbm [shape: bf16[256,128], index: 2, kind: input, shape index: {}]   ;;  %s2460_s3 = inlined_call_operand.hbm [shape: bf16[128,128], index: 3, kind: input, shape index: {}]   ;;  %s2461_s4 = inlined_call_operand.vmem [shape: bf16[128,128], index: 4, kind: input, shape index: {}]   ;;  %s2462_s5 = inlined_call_operand.hbm [shape: bf16[128,256], index: 5, kind: input, shape index: {}]   ;;  %s2463_s6 = inlined_call_operand.hbm [shape: bf16[256,384], index: 6, kind: input, shape index: {}]   ;;  %s2464_s7 = inlined_call_operand.vmem [shape: f32[1,1280], index: 7, kind: input, shape index: {}]   ;;  %s2465_s8 = inlined_call_operand.hbm [shape: f32[8,384], index: 8, kind: output, shape index: {0}]   ;;  %s2466_s9 = inlined_call_operand.vmem [shape: f32[8,128], index: 9, kind: output, shape index: {1}]  }
   0x1   :  { %16 = vsyncpa [#allocation6], 0 }
   0x2   :  { %17 = vsyncpa [#allocation9], 0 }
   0x3   :  { %18 = vsyncpa [#allocation4], 0  ;;  %s2210_s30 = smov [#allocation5]   ;;  %s2070_s13 = scalar_lea.hbm %s2459_s2, 2048 }
   0x4   :  { %s38_s10 = sshll.u32 %s2210_s30, 4  ;;  %p2071_p0 = scmp.ne.s32.totalorder %s2459_s2, %s2070_s13  ;;  %s39_s10 = int_to_ptr.vmem [resolvable:$true] %s38_s10 }
   0x5   :  { %p2074_p1 = scmp.lt.u32.totalorder %s2070_s13, %s2459_s2 }
   0x7   :  { %p2076_p2 = pnand %p2074_p1, %p2071_p0 }
   0x9   :  { %2079 = shalt.err (!%p2076_p2)
}
   0xa   :  { %s2080_s18 = scalar_lea.vmem %s39_s10, 2048  ;;  %p2085_p4 = scmp.lt.s32.totalorder %s39_s10, %s39_s10 }
   0xb   :  { %p2081_p3 = scmp.ne.s32.totalorder %s39_s10, %s2080_s18  ;;  %p2086_p5 = scmp.lt.s32.totalorder %s2080_s18, %s2080_s18 }
   0xd   :  { %p2087_p6 = por %p2086_p5, %p2085_p4 }
   0xf   :  { %p2088_p7 = pnand %p2087_p6, %p2081_p3 }
  0x11   :  { %2091 = shalt.err (!%p2088_p7)
}
  0x12   :  { %s2211_s19 = smov 64   ;;  %s2212_s20 = smov 4  }
  0x13   :  { %44 = dma.hbm_to_vmem [thread:$0]  %s2459_s2, 2048, %s39_s10, [#allocation6], %s2211_s19, %s2211_s19, %s2212_s20  }
  0x14   :  { %s2213_s23 = smov [#allocation8]   ;;  %s2214_s25 = smov [#allocation2]  }
  0x15   :  { %s64_s24 = sshll.u32 %s2213_s23, 4  ;;  %s26_s26 = sshll.u32 %s2214_s25, 4  ;;  %s65_s24 = int_to_ptr.vmem [resolvable:$true] %s64_s24  ;;  %s27_s26 = int_to_ptr.vmem [resolvable:$true] %s26_s26 }
  0x16   :  { %s2092_s29 = scalar_lea.hbm %s2462_s5, 2048 }
  0x17   :  { %p2093_p8 = scmp.ne.s32.totalorder %s2462_s5, %s2092_s29  ;;  %p2096_p9 = scmp.lt.u32.totalorder %s2092_s29, %s2462_s5 }
  0x19   :  { %p2098_p10 = pnand %p2096_p9, %p2093_p8 }
  0x1b   :  { %2101 = shalt.err (!%p2098_p10)
}
  0x1c   :  { %s2102_s2 = scalar_lea.vmem %s65_s24, 2048  ;;  %p2107_p12 = scmp.lt.s32.totalorder %s65_s24, %s65_s24 }
  0x1d   :  { %p2103_p11 = scmp.ne.s32.totalorder %s65_s24, %s2102_s2  ;;  %p2108_p13 = scmp.lt.s32.totalorder %s2102_s2, %s2102_s2 }
  0x1f   :  { %p2109_p0 = por %p2108_p13, %p2107_p12 }
  0x21   :  { %p2110_p1 = pnand %p2109_p0, %p2103_p11 }
  0x23   :  { %2113 = shalt.err (!%p2110_p1)
}
  0x24   :  { %s2215_s10 = smov 128   ;;  %s2216_s14 = smov 8  }
  0x25   :  { %70 = dma.hbm_to_vmem [thread:$0]  %s2462_s5, 2048, %s65_s24, [#allocation9], %s2215_s10, %s2215_s10, %s2216_s14  }
  0x26   :  { %s2114_s21 = scalar_lea.hbm %s2458_s1, 6144 }
  0x27   :  { %p2115_p2 = scmp.ne.s32.totalorder %s2458_s1, %s2114_s21  ;;  %p2118_p3 = scmp.lt.u32.totalorder %s2114_s21, %s2458_s1 }
  0x29   :  { %p2120_p4 = pnand %p2118_p3, %p2115_p2 }
  0x2b   :  { %2123 = shalt.err (!%p2120_p4)
}
  0x2c   :  { %s2124_s28 = scalar_lea.vmem %s27_s26, 6144  ;;  %p2129_p6 = scmp.lt.s32.totalorder %s27_s26, %s27_s26 }
  0x2d   :  { %p2125_p5 = scmp.ne.s32.totalorder %s27_s26, %s2124_s28  ;;  %p2130_p7 = scmp.lt.s32.totalorder %s2124_s28, %s2124_s28 }
  0x2f   :  { %p2131_p8 = por %p2130_p7, %p2129_p6 }
  0x31   :  { %p2132_p9 = pnand %p2131_p8, %p2125_p5 }
  0x33   :  { %2135 = shalt.err (!%p2132_p9)
}
  0x34   :  { %32 = dma.hbm_to_vmem [thread:$0]  %s2458_s1, 6144, %s27_s26, [#allocation3], %s2215_s10, %s2215_s10, %s2216_s14  }
  0x35   :  { %s2217_s29 = smov [#allocation7]   ;;  %s2218_s11 = smov [#allocation10]  }
  0x36   :  { %s50_s30 = sshll.u32 %s2217_s29, 4  ;;  %s76_s12 = sshll.u32 %s2218_s11, 4  ;;  %s51_s30 = int_to_ptr.vmem [resolvable:$true] %s50_s30  ;;  %s77_s12 = int_to_ptr.vmem [resolvable:$true] %s76_s12 }
  0x37   :  { %s2136_s15 = scalar_lea.hbm %s2460_s3, 1024 }
  0x38   :  { %p2137_p10 = scmp.ne.s32.totalorder %s2460_s3, %s2136_s15  ;;  %p2140_p11 = scmp.lt.u32.totalorder %s2136_s15, %s2460_s3 }
  0x3a   :  { %p2142_p12 = pnand %p2140_p11, %p2137_p10 }
  0x3c   :  { %2145 = shalt.err (!%p2142_p12)
}
  0x3d   :  { %s2146_s1 = scalar_lea.vmem %s51_s30, 1024  ;;  %p2151_p0 = scmp.lt.s32.totalorder %s51_s30, %s51_s30 }
  0x3e   :  { %p2147_p13 = scmp.ne.s32.totalorder %s51_s30, %s2146_s1  ;;  %p2152_p1 = scmp.lt.s32.totalorder %s2146_s1, %s2146_s1 }
  0x40   :  { %p2153_p2 = por %p2152_p1, %p2151_p0 }
  0x42   :  { %p2154_p3 = pnand %p2153_p2, %p2147_p13 }
  0x44   :  { %2157 = shalt.err (!%p2154_p3)
}
  0x45   :  { %56 = dma.hbm_to_vmem [thread:$0]  %s2460_s3, 1024, %s51_s30, [#allocation6], %s2211_s19, %s2211_s19, %s2212_s20  }
  0x46   :  { %s2158_s23 = scalar_lea.hbm %s2463_s6, 6144 }
  0x47   :  { %p2159_p4 = scmp.ne.s32.totalorder %s2463_s6, %s2158_s23  ;;  %p2162_p5 = scmp.lt.u32.totalorder %s2158_s23, %s2463_s6 }
  0x49   :  { %p2164_p6 = pnand %p2162_p5, %p2159_p4 }
  0x4b   :  { %2167 = shalt.err (!%p2164_p6)
}
  0x4c   :  { %s2168_s24 = scalar_lea.vmem %s77_s12, 6144  ;;  %p2173_p8 = scmp.lt.s32.totalorder %s77_s12, %s77_s12 }
  0x4d   :  { %p2169_p7 = scmp.ne.s32.totalorder %s77_s12, %s2168_s24  ;;  %p2174_p9 = scmp.lt.s32.totalorder %s2168_s24, %s2168_s24 }
  0x4f   :  { %p2175_p10 = por %p2174_p9, %p2173_p8 }
  0x51   :  { %p2176_p11 = pnand %p2175_p10, %p2169_p7 }
  0x53   :  { %2179 = shalt.err (!%p2176_p11)
}
  0x54   :  { %s2219_s3 = smov 192   ;;  %s2220_s19 = smov 12  }
  0x55   :  { %82 = dma.hbm_to_vmem [thread:$0]  %s2463_s6, 6144, %s77_s12, [#allocation9], %s2219_s3, %s2219_s3, %s2220_s19  }
  0x56   :  { %2202 = dma.done.wait [#allocation3], 6144  }
  0x57   :  { %2203 = vsyncadd [#allocation3], 4294961152 }
  0x58   :  { %2204 = dma.done.wait [#allocation6], 3072  }
  0x59   :  { %2205 = vsyncadd [#allocation6], 4294964224 }
  0x5a   :  { %2206 = dma.done.wait [#allocation9], 8192  }
  0x5b   :  { %2207 = vsyncadd [#allocation9], 4294959104  ;;  %v101_v0 = vld [vmem:[%s2457_s0] sm:$0xff]  ;;  %v102_v1 = vld [vmem:[%s2457_s0 + $0x8] sm:$0xff]  ;;  %v2221_v62 = vmov 0   ;;  %vm2223_vm0 = vmmov 0  }
  0x5c   :  { %v103_v2 = vld [vmem:[%s2457_s0 + $0x10] sm:$0xff]  ;;  %v153_v3 = vadd.f32 %v102_v1, %v101_v0  ;;  %v1866_v5 = vld [vmem:[#allocation2 + $0x4] ss:$8 sps:$4 sm:$0xff]   ;;  %v1868_v6 = vld [vmem:[#allocation2] ss:$8 sps:$4 sm:$0xff]   ;;  %s2224_s6 = smov [#allocation11]  }
  0x5d   :  { %v1869_v7 = vld [vmem:[#allocation2 + $0x14] ss:$8 sps:$4 sm:$0xff]   ;;  %431 = vmatprep.subr.bf16.mxu0 %v1866_v5  ;;  %v1871_v8 = vld [vmem:[#allocation2 + $0x10] ss:$8 sps:$4 sm:$0xff]   ;;  %v1872_v9 = vld [vmem:[#allocation2 + $0x24] ss:$8 sps:$4 sm:$0xff]  }
  0x5e   :  { %v154_v4 = vadd.f32 %v153_v3, %v103_v2  ;;  %432 = vmatpush1.bf16.msra.mxu0 %v1868_v6  ;;  %v1874_v10 = vld [vmem:[#allocation2 + $0x20] ss:$8 sps:$4 sm:$0xff]   ;;  %v1875_v11 = vld [vmem:[#allocation2 + $0x34] ss:$8 sps:$4 sm:$0xff]   ;;  %v1877_v12 = vld [vmem:[#allocation2 + $0x30] ss:$8 sps:$4 sm:$0xff]  }
  0x5f   :  { %433 = vmatprep.subr.bf16.mxu0 %v1869_v7  ;;  %v1878_v13 = vld [vmem:[#allocation2 + $0x44] ss:$8 sps:$4 sm:$0xff]   ;;  %v1880_v14 = vld [vmem:[#allocation2 + $0x40] ss:$8 sps:$4 sm:$0xff]   ;;  %v1881_v15 = vld [vmem:[#allocation2 + $0x54] ss:$8 sps:$4 sm:$0xff]  }
  0x60   :  { %155 = vadd.xlane.f32.xlu0 %v154_v4  ;;  %v1883_v16 = vld [vmem:[#allocation2 + $0x50] ss:$8 sps:$4 sm:$0xff]   ;;  %v1884_v17 = vld [vmem:[#allocation2 + $0x64] ss:$8 sps:$4 sm:$0xff]   ;;  %v1886_v18 = vld [vmem:[#allocation2 + $0x60] ss:$8 sps:$4 sm:$0xff]  }
  0x61   :  { %v1887_v19 = vld [vmem:[#allocation2 + $0x74] ss:$8 sps:$4 sm:$0xff]   ;;  %v1889_v20 = vld [vmem:[#allocation2 + $0x70] ss:$8 sps:$4 sm:$0xff]   ;;  %v1890_v21 = vld [vmem:[#allocation2 + $0x84] ss:$8 sps:$4 sm:$0xff]  }
  0x62   :  { %434 = vmatpush1.bf16.msra.mxu0 %v1871_v8  ;;  %v1892_v22 = vld [vmem:[#allocation2 + $0x80] ss:$8 sps:$4 sm:$0xff]   ;;  %v1893_v23 = vld [vmem:[#allocation2 + $0x94] ss:$8 sps:$4 sm:$0xff]   ;;  %v1895_v24 = vld [vmem:[#allocation2 + $0x90] ss:$8 sps:$4 sm:$0xff]  }
  0x63   :  { %435 = vmatprep.subr.bf16.mxu0 %v1872_v9  ;;  %v1896_v25 = vld [vmem:[#allocation2 + $0xa4] ss:$8 sps:$4 sm:$0xff]   ;;  %v1898_v26 = vld [vmem:[#allocation2 + $0xa0] ss:$8 sps:$4 sm:$0xff]   ;;  %v1899_v37 = vld [vmem:[#allocation2 + $0xb4] ss:$8 sps:$4 sm:$0xff]  }
  0x64   :  { %v1901_v38 = vld [vmem:[#allocation2 + $0xb0] ss:$8 sps:$4 sm:$0xff]   ;;  %v1902_v39 = vld [vmem:[#allocation2 + $0xc4] ss:$8 sps:$4 sm:$0xff]   ;;  %v1904_v40 = vld [vmem:[#allocation2 + $0xc0] ss:$8 sps:$4 sm:$0xff]  }
  0x65   :  { %v1905_v41 = vld [vmem:[#allocation2 + $0xd4] ss:$8 sps:$4 sm:$0xff]   ;;  %v1907_v42 = vld [vmem:[#allocation2 + $0xd0] ss:$8 sps:$4 sm:$0xff]   ;;  %v1908_v43 = vld [vmem:[#allocation2 + $0xe4] ss:$8 sps:$4 sm:$0xff]  }
  0x66   :  { %436 = vmatpush1.bf16.msra.mxu0 %v1874_v10  ;;  %v1910_v44 = vld [vmem:[#allocation2 + $0xe0] ss:$8 sps:$4 sm:$0xff]   ;;  %v1911_v45 = vld [vmem:[#allocation2 + $0xf4] ss:$8 sps:$4 sm:$0xff]   ;;  %v1913_v46 = vld [vmem:[#allocation2 + $0xf0] ss:$8 sps:$4 sm:$0xff]  }
  0x67   :  { %437 = vmatprep.subr.bf16.mxu0 %v1875_v11  ;;  %v1916_v47 = vld [vmem:[#allocation2 + $0x104] ss:$8 sps:$4 sm:$0xff]   ;;  %v1914_v58 = vld [vmem:[#allocation2 + $0x100] ss:$8 sps:$4 sm:$0xff]   ;;  %v1919_v60 = vld [vmem:[#allocation2 + $0x114] ss:$8 sps:$4 sm:$0xff]  }
  0x68   :  { %v1917_v61 = vld [vmem:[#allocation2 + $0x110] ss:$8 sps:$4 sm:$0xff]   ;;  %v1922_v63 = vld [vmem:[#allocation2 + $0x124] ss:$8 sps:$4 sm:$0xff]   ;;  %v1926_v4 = vld [vmem:[#allocation2 + $0x140] ss:$8 sps:$4 sm:$0xff]  }
  0x69   :  { %v1928_v3 = vld [vmem:[#allocation2 + $0x144] ss:$8 sps:$4 sm:$0xff]   ;;  %v1931_v5 = vld [vmem:[#allocation2 + $0x154] ss:$8 sps:$4 sm:$0xff]   ;;  %v1929_v6 = vld [vmem:[#allocation2 + $0x150] ss:$8 sps:$4 sm:$0xff]  }
  0x6a   :  { %438 = vmatpush1.bf16.msra.mxu0 %v1877_v12  ;;  %v1934_v7 = vld [vmem:[#allocation2 + $0x164] ss:$8 sps:$4 sm:$0xff]   ;;  %v1932_v8 = vld [vmem:[#allocation2 + $0x160] ss:$8 sps:$4 sm:$0xff]   ;;  %v1937_v9 = vld [vmem:[#allocation2 + $0x174] ss:$8 sps:$4 sm:$0xff]  }
  0x6b   :  { %439 = vmatprep.subr.bf16.mxu0 %v1878_v13  ;;  %v1935_v10 = vld [vmem:[#allocation2 + $0x170] ss:$8 sps:$4 sm:$0xff]   ;;  %v181_v13 = vlaneseq  ;;  %s1581_s12 = sshll.u32 %s2224_s6, 4  ;;  %s1582_s12 = int_to_ptr.vmem [resolvable:$true] %s1581_s12 }
  0x6c   :  { %p2185_p13 = scmp.lt.s32.totalorder %s1582_s12, %s1582_s12 }
  0x6e   :  { %440 = vmatpush1.bf16.msra.mxu0 %v1880_v14  ;;  %v2355_v14 = vshrl.u32 %v181_v13, 7 }
  0x6f   :  { %441 = vmatprep.subr.bf16.mxu0 %v1881_v15 }
  0x70   :  { %v2358_v15 = vsub.s32 0, %v2355_v14 }
  0x72   :  { %442 = vmatpush1.bf16.msra.mxu0 %v1883_v16  ;;  %v104_v16 = vld [vmem:[%s2464_s7] sm:$0x3] }
  0x73   :  { %443 = vmatprep.subr.bf16.mxu0 %v1884_v17  ;;  %v2364_v17 = vsub.s32 1, %v2355_v14 }
  0x76   :  { %444 = vmatpush1.bf16.msra.mxu0 %v1886_v18  ;;  %v184_v18 = vrot.slane %v104_v16, %v2358_v15 }
  0x77   :  { %445 = vmatprep.subr.bf16.mxu0 %v1887_v19  ;;  %v188_v19 = vrot.slane %v104_v16, %v2364_v17 }
  0x7a   :  { %446 = vmatpush1.bf16.msra.mxu0 %v1889_v20 }
  0x7b   :  { %447 = vmatprep.subr.bf16.mxu0 %v1890_v21 }
  0x7e   :  { %448 = vmatpush1.bf16.msra.mxu0 %v1892_v22 }
  0x7f   :  { %449 = vmatprep.subr.bf16.mxu0 %v1893_v23 }
  0x82   :  { %450 = vmatpush1.bf16.msra.mxu0 %v1895_v24 }
  0x83   :  { %451 = vmatprep.subr.bf16.mxu0 %v1896_v25 }
  0x86   :  { %452 = vmatpush1.bf16.msra.mxu0 %v1898_v26 }
  0x87   :  { %453 = vmatprep.subr.bf16.mxu0 %v1899_v37 }
  0x8a   :  { %454 = vmatpush1.bf16.msra.mxu0 %v1901_v38 }
  0x8b   :  { %455 = vmatprep.subr.bf16.mxu0 %v1902_v39 }
  0x8e   :  { %456 = vmatpush1.bf16.msra.mxu0 %v1904_v40 }
  0x8f   :  { %457 = vmatprep.subr.bf16.mxu0 %v1905_v41 }
  0x92   :  { %458 = vmatpush1.bf16.msra.mxu0 %v1907_v42  ;;  %v1944_v42 = vld [vmem:[#allocation5 + $0x58] sm:$0xff]  }
  0x93   :  { %459 = vmatprep.subr.bf16.mxu0 %v1908_v43  ;;  %v1945_v43 = vld [vmem:[#allocation5 + $0x18] sm:$0xff]  }
  0x96   :  { %460 = vmatpush1.bf16.msra.mxu0 %v1910_v44  ;;  %v1946_v44 = vld [vmem:[#allocation5 + $0x60] sm:$0xff]  }
  0x97   :  { %461 = vmatprep.subr.bf16.mxu0 %v1911_v45  ;;  %v1947_v45 = vld [vmem:[#allocation5 + $0x20] sm:$0xff]  }
  0x9a   :  { %462 = vmatpush1.bf16.msra.mxu0 %v1913_v46  ;;  %v1948_v46 = vld [vmem:[#allocation5 + $0x68] sm:$0xff]  }
  0x9b   :  { %472 = vmatprep.subr.bf16.mxu0 %v1916_v47  ;;  %v1949_v47 = vld [vmem:[#allocation5 + $0x28] sm:$0xff]  }
  0xed   :  { %v156_v27 = vpop.xlane.xlu0 %155 }
  0xee   :  { %v157_v28 = vmul.f32 0.0033333334, %v156_v27 }
  0xf0   :  { %v158_v29 = vsub.f32 %v101_v0, %v157_v28  ;;  %v159_v30 = vsub.f32 %v102_v1, %v157_v28  ;;  %v2350_v31 = vsub.f32 %v103_v2, %v157_v28  ;;  %v168_v48 = vmul.f32 %v157_v28, %v157_v28  ;;  %v1920_v0 = vld [vmem:[#allocation2 + $0x120] ss:$8 sps:$4 sm:$0xff]   ;;  %v1925_v1 = vld [vmem:[#allocation2 + $0x134] ss:$8 sps:$4 sm:$0xff]   ;;  %v1923_v2 = vld [vmem:[#allocation2 + $0x130] ss:$8 sps:$4 sm:$0xff]  }
  0xf2   :  { %v161_v32 = vmul.f32 %v158_v29, %v158_v29  ;;  %v162_v33 = vmul.f32 %v159_v30, %v159_v30  ;;  %v163_v34 = vmul.f32 %v2350_v31, %v2350_v31  ;;  %v169_v49 = vmul.f32 84.0, %v168_v48  ;;  %v1950_v48 = vld [vmem:[#allocation5 + $0x70] sm:$0xff]  }
  0xf4   :  { %v164_v35 = vadd.f32 %v162_v33, %v161_v32  ;;  %v1941_v32 = vld [vmem:[#allocation5 + $0x8] sm:$0xff]   ;;  %v1942_v33 = vld [vmem:[#allocation5 + $0x50] sm:$0xff]  }
  0xf6   :  { %v165_v36 = vadd.f32 %v164_v35, %v163_v34  ;;  %v1943_v34 = vld [vmem:[#allocation5 + $0x10] sm:$0xff]  }
  0xf8   :  { %166 = vadd.xlane.f32.xlu0 %v165_v36 }
 0x185   :  { %v167_v50 = vpop.xlane.xlu0 %166 }
 0x186   :  { %v170_v51 = vsub.f32 %v167_v50, %v169_v49  ;;  %v1951_v49 = vld [vmem:[#allocation5 + $0x30] sm:$0xff]   ;;  %v1952_v50 = vld [vmem:[#allocation5 + $0x78] sm:$0xff]  }
 0x188   :  { %v171_v52 = vmul.f32 0.0033333334, %v170_v51  ;;  %v1953_v51 = vld [vmem:[#allocation5 + $0x38] sm:$0xff]  }
 0x18a   :  { %v172_v53 = vadd.f32 1e-05, %v171_v52 }
 0x18c   :  { %2058 = vrsqrt.f32 %v172_v53 }
 0x196   :  { %v2059_v54 = vpop.eup %2058 }
 0x197   :  { %v175_v55 = vmul.f32 %v2059_v54, %v159_v30  ;;  %v174_v56 = vmul.f32 %v2059_v54, %v158_v29  ;;  %v176_v11 = vmul.f32 %v2059_v54, %v2350_v31  ;;  %v1938_v29 = vld [vmem:[#allocation5 + $0x40] sm:$0xff]   ;;  %v1940_v31 = vld [vmem:[#allocation5 + $0x48] sm:$0xff]  }
 0x198   :  { %v1939_v30 = vld [vmem:[#allocation5] sm:$0xff]   ;;  %1743 = vmatprep.subr.bf16.mxu1 %v1938_v29 }
 0x199   :  { %v178_v57 = vpack.c.bf16 %v175_v55, %v175_v55  ;;  %v177_v59 = vpack.c.bf16 %v174_v56, %v174_v56  ;;  %v179_v12 = vpack.c.bf16 %v176_v11, %v176_v11  ;;  %1744 = vmatpush3.bf16.msra.mxu1 %v1939_v30 }
 0x19a   :  { %1745 = vmatprep.subr.bf16.mxu1 %v1940_v31 }
 0x19b   :  { %463 = vmatprep.mubr.bf16.mxu0 %v178_v57 }
 0x19c   :  { %464 = vmatmul.mubr.bf16.vlgmr.msra.gmra.mrb[0].mxu0 %v177_v59 }
 0x19d   :  { %473 = vmatpush1.bf16.msra.mxu0 %v1914_v58  ;;  %504 = vmatprep.mubr.bf16.mxu0 %v2221_v62 }
 0x19e   :  { %474 = vmatprep.subr.bf16.mxu0 %v1919_v60  ;;  %1746 = vmatpush3.bf16.msra.mxu1 %v1941_v32  ;;  %v1661_v32 = vld [vmem:[%s2464_s7 + $0x3] ss:$0 sm:$0xff] }
 0x19f   :  { %1747 = vmatprep.subr.bf16.mxu1 %v1942_v33 }
 0x1a1   :  { %475 = vmatpush1.bf16.msra.mxu0 %v1917_v61 }
 0x1a2   :  { %476 = vmatprep.subr.bf16.mxu0 %v1922_v63  ;;  %1748 = vmatpush3.bf16.msra.mxu1 %v1943_v34 }
 0x1a3   :  { %1749 = vmatprep.subr.bf16.mxu1 %v1944_v42 }
 0x1a5   :  { %477 = vmatpush1.bf16.msra.mxu0 %v1920_v0 }
 0x1a6   :  { %478 = vmatprep.subr.bf16.mxu0 %v1925_v1  ;;  %1750 = vmatpush3.bf16.msra.mxu1 %v1945_v43  ;;  %v1644_v1 = vld [vmem:[%s2464_s7 + $0x2] ss:$0 sm:$0xff] }
 0x1a7   :  { %1751 = vmatprep.subr.bf16.mxu1 %v1946_v44 }
 0x1a9   :  { %479 = vmatpush1.bf16.msra.mxu0 %v1923_v2 }
 0x1aa   :  { %480 = vmatprep.subr.bf16.mxu0 %v1928_v3  ;;  %1752 = vmatpush3.bf16.msra.mxu1 %v1947_v45 }
 0x1ab   :  { %1753 = vmatprep.subr.bf16.mxu1 %v1948_v46  ;;  %v1965_v46 = vld [vmem:[%s2461_s4 + $0x18] sm:$0xff]  }
 0x1ad   :  { %481 = vmatpush1.bf16.msra.mxu0 %v1926_v4 }
 0x1ae   :  { %482 = vmatprep.subr.bf16.mxu0 %v1931_v5  ;;  %1754 = vmatpush3.bf16.msra.mxu1 %v1949_v47  ;;  %v1966_v47 = vld [vmem:[%s2461_s4 + $0x20] sm:$0xff]  }
 0x1af   :  { %1755 = vmatprep.subr.bf16.mxu1 %v1950_v48  ;;  %v1967_v48 = vld [vmem:[%s2461_s4 + $0x28] sm:$0xff]  }
 0x1b1   :  { %483 = vmatpush1.bf16.msra.mxu0 %v1929_v6 }
 0x1b2   :  { %484 = vmatprep.subr.bf16.mxu0 %v1934_v7  ;;  %1756 = vmatpush3.bf16.msra.mxu1 %v1951_v49  ;;  %v1954_v7 = vld [vmem:[#allocation7] sm:$0xff]   ;;  %v1968_v49 = vld [vmem:[%s2461_s4 + $0x30] sm:$0xff]  }
 0x1b3   :  { %1757 = vmatprep.subr.bf16.mxu1 %v1952_v50  ;;  %v1969_v50 = vld [vmem:[%s2461_s4 + $0x38] sm:$0xff]  }
 0x1b5   :  { %485 = vmatpush1.bf16.msra.mxu0 %v1932_v8  ;;  %v2222_v8 = vmov 0.0  }
 0x1b6   :  { %486 = vmatprep.subr.bf16.mxu0 %v1937_v9  ;;  %1758 = vmatpush3.bf16.msra.mxu1 %v1953_v51  ;;  %v1955_v9 = vld [vmem:[#allocation7 + $0x8] sm:$0xff]  }
 0x1b7   :  { %1805 = vmatprep.subr.bf16.mxu1 %v2222_v8 }
 0x1b9   :  { %487 = vmatpush1.bf16.msra.mxu0 %v1935_v10  ;;  %v1956_v10 = vld [vmem:[#allocation7 + $0x10] sm:$0xff]  }
 0x1bc   :  { %505 = vmatmul.mubr.bf16.vlgmr.msra.gmra.mrb[0].mxu0 %v179_v12 }
 0x1bd   :  { %1122 = vmatprep.mubr.bf16.mxu0 %v2221_v62 }
 0x28f   :  { %v506_v20 = vpop.f32.mrb[0].mxu0 }
 0x290   :  { %v1845_v21 = vadd.f32 %v506_v20, %v184_v18  ;;  %v508_v22 = vpop.f32.mrb[1].mxu0  ;;  %v1957_v18 = vld [vmem:[#allocation7 + $0x18] sm:$0xff]   ;;  %v1959_v20 = vld [vmem:[#allocation7 + $0x28] sm:$0xff]  }
 0x291   :  { %v1846_v23 = vadd.f32 %v508_v22, %v188_v19  ;;  %v510_v24 = vpop.f32.mrb[2].mxu0  ;;  %v1958_v19 = vld [vmem:[#allocation7 + $0x20] sm:$0xff]   ;;  %v1961_v22 = vld [vmem:[#allocation7 + $0x38] sm:$0xff]  }
 0x292   :  { %v513_v25 = vmax.f32 %v1845_v21, 0.0  ;;  %v511_v26 = vpop.f32.mrb[3].mxu0  ;;  %v1960_v21 = vld [vmem:[#allocation7 + $0x30] sm:$0xff]  }
 0x293   :  { %v514_v27 = vmax.f32 %v1846_v23, 0.0 }
 0x295   :  { %v548_v28 = vadd.f32 %v514_v27, %v513_v25 }
 0x297   :  { %549 = vadd.xlane.f32.xlu1 %v548_v28 }
 0x324   :  { %v550_v35 = vpop.xlane.xlu1 %549 }
 0x325   :  { %v551_v36 = vmul.f32 0.0049751243, %v550_v35 }
 0x327   :  { %v552_v37 = vsub.f32 %v513_v25, %v551_v36  ;;  %v553_v38 = vsub.f32 %v514_v27, %v551_v36  ;;  %v559_v52 = vmul.f32 %v551_v36, %v551_v36 }
 0x329   :  { %v554_v39 = vmul.f32 %v552_v37, %v552_v37  ;;  %v555_v40 = vmul.f32 %v553_v38, %v553_v38  ;;  %v560_v53 = vmul.f32 55.0, %v559_v52 }
 0x32b   :  { %v556_v41 = vadd.f32 %v555_v40, %v554_v39  ;;  %v1962_v39 = vld [vmem:[%s2461_s4] sm:$0xff]   ;;  %v1963_v40 = vld [vmem:[%s2461_s4 + $0x8] sm:$0xff]  }
 0x32d   :  { %557 = vadd.xlane.f32.xlu1 %v556_v41  ;;  %v1964_v41 = vld [vmem:[%s2461_s4 + $0x10] sm:$0xff]  }
 0x3ba   :  { %v558_v54 = vpop.xlane.xlu1 %557 }
 0x3bb   :  { %v561_v55 = vsub.f32 %v558_v54, %v560_v53 }
 0x3bd   :  { %v562_v56 = vmul.f32 0.0049751243, %v561_v55 }
 0x3bf   :  { %v563_v57 = vadd.f32 1e-05, %v562_v56 }
 0x3c1   :  { %2060 = vrsqrt.f32 %v563_v57 }
 0x3cb   :  { %v2061_v58 = vpop.eup %2060 }
 0x3cc   :  { %v566_v59 = vmul.f32 %v2061_v58, %v553_v38  ;;  %v565_v60 = vmul.f32 %v2061_v58, %v552_v37 }
 0x3ce   :  { %v568_v61 = vpack.c.bf16 %v566_v59, %v566_v59  ;;  %v567_v62 = vpack.c.bf16 %v565_v60, %v565_v60  ;;  %v1670_v60 = vld [vmem:[%s2464_s7 + $0x4] ss:$0 sm:$0xff] }
 0x3d0   :  { %703 = vmatprep.mubr.bf16.mxu1 %v568_v61 }
 0x3d1   :  { %704 = vmatmul.mubr.bf16.vlgmr.msra.gmra.mrb[0].mxu1 %v567_v62 }
 0x3d2   :  { %1806 = vmatpush3.bf16.msra.mxu1 %v1954_v7  ;;  %1821 = vmatprep.mubr.msk.bf16.mxu1 %vm2223_vm0, %v2222_v8  ;;  %v1978_v7 = vld [vmem:[#allocation8 + $0x24] ss:$8 sps:$4 sm:$0xff]  }
 0x3d3   :  { %1807 = vmatprep.subr.bf16.mxu1 %v2222_v8 }
 0x3d6   :  { %1808 = vmatpush3.bf16.msra.mxu1 %v1955_v9 }
 0x3d7   :  { %1809 = vmatprep.subr.bf16.mxu1 %v2222_v8 }
 0x3da   :  { %1810 = vmatpush3.bf16.msra.mxu1 %v1956_v10 }
 0x3db   :  { %1811 = vmatprep.subr.bf16.mxu1 %v2222_v8 }
 0x3de   :  { %1812 = vmatpush3.bf16.msra.mxu1 %v1957_v18  ;;  %v1984_v18 = vld [vmem:[#allocation8 + $0x44] ss:$8 sps:$4 sm:$0xff]  }
 0x3df   :  { %1813 = vmatprep.subr.bf16.mxu1 %v2222_v8 }
 0x3e2   :  { %1814 = vmatpush3.bf16.msra.mxu1 %v1958_v19  ;;  %v1982_v19 = vld [vmem:[#allocation8 + $0x40] ss:$8 sps:$4 sm:$0xff]  }
 0x3e3   :  { %1815 = vmatprep.subr.bf16.mxu1 %v2222_v8 }
 0x3e6   :  { %1816 = vmatpush3.bf16.msra.mxu1 %v1959_v20  ;;  %v1985_v20 = vld [vmem:[#allocation8 + $0x50] ss:$8 sps:$4 sm:$0xff]  }
 0x3e7   :  { %1817 = vmatprep.subr.bf16.mxu1 %v2222_v8 }
 0x3ea   :  { %1818 = vmatpush3.bf16.msra.mxu1 %v1960_v21  ;;  %v1987_v21 = vld [vmem:[#allocation8 + $0x54] ss:$8 sps:$4 sm:$0xff]  }
 0x3eb   :  { %1819 = vmatprep.subr.bf16.mxu1 %v2222_v8 }
 0x3ee   :  { %1820 = vmatpush3.bf16.msra.mxu1 %v1961_v22  ;;  %v1990_v22 = vld [vmem:[#allocation8 + $0x64] ss:$8 sps:$4 sm:$0xff]  }
 0x3ef   :  { %1825 = vmatprep.subr.bf16.mxu1 %v2222_v8 }
 0x4a4   :  { %v1759_v63 = vpop.f32.mrb[0].mxu1 }
 0x4a5   :  { %v1760_v0 = vpop.f32.mrb[1].mxu1 }
 0x4a6   :  { %v1761_v2 = vadd.f32 %v1760_v0, %v1759_v63  ;;  %v1762_v3 = vpop.f32.mrb[2].mxu1 }
 0x4a7   :  { %v1763_v4 = vpop.f32.mrb[3].mxu1  ;;  %v1970_v3 = vld [vmem:[#allocation8] ss:$8 sps:$4 sm:$0xff]  }
 0x4a8   :  { %v706_v5 = vadd.f32 %v1761_v2, %v1644_v1  ;;  %v1972_v4 = vld [vmem:[#allocation8 + $0x4] ss:$8 sps:$4 sm:$0xff]  }
 0x4a9   :  { %1090 = vmatprep.subr.bf16.mxu0 %v1972_v4  ;;  %v2015_v4 = vld [vmem:[#allocation10 + $0xa8] ss:$12 sps:$4 sm:$0xff]  }
 0x4aa   :  { %v711_v6 = vmax.f32 %v706_v5, 0.0  ;;  %v1975_v5 = vld [vmem:[#allocation8 + $0x14] ss:$8 sps:$4 sm:$0xff]   ;;  %1091 = vmatpush1.bf16.msra.mxu0 %v1970_v3  ;;  %v2017_v3 = vld [vmem:[#allocation10 + $0xac] ss:$12 sps:$4 sm:$0xff]  }
 0x4ab   :  { %1092 = vmatprep.subr.bf16.mxu0 %v1975_v5  ;;  %v2020_v5 = vld [vmem:[#allocation10 + $0xc4] ss:$12 sps:$4 sm:$0xff]  }
 0x4ac   :  { %729 = vadd.xlane.f32.xlu0 %v711_v6 }
 0x539   :  { %v730_v11 = vpop.xlane.xlu0 %729 }
 0x53a   :  { %v731_v12 = vmul.f32 0.009803922, %v730_v11 }
 0x53c   :  { %v732_v13 = vsub.f32 %v711_v6, %v731_v12  ;;  %v736_v23 = vmul.f32 %v731_v12, %v731_v12  ;;  %v1973_v6 = vld [vmem:[#allocation8 + $0x10] ss:$8 sps:$4 sm:$0xff]  }
 0x53d   :  { %1093 = vmatpush1.bf16.msra.mxu0 %v1973_v6  ;;  %v2018_v6 = vld [vmem:[#allocation10 + $0xc0] ss:$12 sps:$4 sm:$0xff]  }
 0x53e   :  { %v733_v16 = vmul.f32 %v732_v13, %v732_v13  ;;  %v737_v24 = vmul.f32 26.0, %v736_v23  ;;  %1094 = vmatprep.subr.bf16.mxu0 %v1978_v7  ;;  %v1988_v23 = vld [vmem:[#allocation8 + $0x60] ss:$8 sps:$4 sm:$0xff]  }
 0x53f   :  { %v2025_v7 = vld [vmem:[#allocation10 + $0xdc] ss:$12 sps:$4 sm:$0xff]  }
 0x540   :  { %734 = vadd.xlane.f32.xlu1 %v733_v16  ;;  %v1979_v16 = vld [vmem:[#allocation8 + $0x30] ss:$8 sps:$4 sm:$0xff]  }
 0x5cd   :  { %v735_v25 = vpop.xlane.xlu1 %734 }
 0x5ce   :  { %v738_v26 = vsub.f32 %v735_v25, %v737_v24  ;;  %v1993_v24 = vld [vmem:[#allocation8 + $0x74] ss:$8 sps:$4 sm:$0xff]   ;;  %v1991_v25 = vld [vmem:[#allocation8 + $0x70] ss:$8 sps:$4 sm:$0xff]  }
 0x5d0   :  { %v739_v27 = vmul.f32 0.009803922, %v738_v26 }
 0x5d2   :  { %v740_v28 = vadd.f32 1e-05, %v739_v27 }
 0x5d4   :  { %2062 = vrsqrt.f32 %v740_v28 }
 0x5de   :  { %v2063_v29 = vpop.eup %2062 }
 0x5df   :  { %v742_v30 = vmul.f32 %v2063_v29, %v732_v13  ;;  %v1981_v13 = vld [vmem:[#allocation8 + $0x34] ss:$8 sps:$4 sm:$0xff]  }
 0x5e1   :  { %v743_v31 = vpack.c.bf16 %v742_v30, %v742_v30 }
 0x5e3   :  { %1822 = vmatmul.mubr.bf16.vlgmr.msra.gmra.mrb[4].mxu1 %v743_v31 }
 0x5e4   :  { %1841 = vmatprep.mubr.msk.bf16.mxu1 %vm2223_vm0, %v2222_v8  ;;  %1826 = vmatpush3.bf16.msra.mxu1 %v1962_v39 }
 0x5e5   :  { %1827 = vmatprep.subr.bf16.mxu1 %v2222_v8 }
 0x5e8   :  { %1828 = vmatpush3.bf16.msra.mxu1 %v1963_v40 }
 0x5e9   :  { %1829 = vmatprep.subr.bf16.mxu1 %v2222_v8 }
 0x5ec   :  { %1830 = vmatpush3.bf16.msra.mxu1 %v1964_v41 }
 0x5ed   :  { %1831 = vmatprep.subr.bf16.mxu1 %v2222_v8 }
 0x5f0   :  { %1832 = vmatpush3.bf16.msra.mxu1 %v1965_v46 }
 0x5f1   :  { %1833 = vmatprep.subr.bf16.mxu1 %v2222_v8 }
 0x5f4   :  { %1834 = vmatpush3.bf16.msra.mxu1 %v1966_v47  ;;  %v1994_v47 = vld [vmem:[#allocation10] ss:$12 sps:$4 sm:$0xff]  }
 0x5f5   :  { %1835 = vmatprep.subr.bf16.mxu1 %v2222_v8 }
 0x5f8   :  { %1836 = vmatpush3.bf16.msra.mxu1 %v1967_v48  ;;  %v1996_v48 = vld [vmem:[#allocation10 + $0x4] ss:$12 sps:$4 sm:$0xff]  }
 0x5f9   :  { %1837 = vmatprep.subr.bf16.mxu1 %v2222_v8 }
 0x5fc   :  { %1838 = vmatpush3.bf16.msra.mxu1 %v1968_v49  ;;  %v1999_v49 = vld [vmem:[#allocation10 + $0x1c] ss:$12 sps:$4 sm:$0xff]  }
 0x5fd   :  { %1839 = vmatprep.subr.bf16.mxu1 %v2222_v8  ;;  %v1976_v8 = vld [vmem:[#allocation8 + $0x20] ss:$8 sps:$4 sm:$0xff]  }
 0x5fe   :  { %1095 = vmatpush1.bf16.msra.mxu0 %v1976_v8  ;;  %v2023_v8 = vld [vmem:[#allocation10 + $0xd8] ss:$12 sps:$4 sm:$0xff]  }
 0x5ff   :  { %1096 = vmatprep.subr.bf16.mxu0 %v1981_v13 }
 0x600   :  { %1840 = vmatpush3.bf16.msra.mxu1 %v1969_v50  ;;  %v1997_v50 = vld [vmem:[#allocation10 + $0x18] ss:$12 sps:$4 sm:$0xff]  }
 0x601   :  { %1491 = vmatprep.subr.bf16.mxu1 %v1996_v48 }
 0x602   :  { %1097 = vmatpush1.bf16.msra.mxu0 %v1979_v16 }
 0x603   :  { %1098 = vmatprep.subr.bf16.mxu0 %v1984_v18 }
 0x606   :  { %1099 = vmatpush1.bf16.msra.mxu0 %v1982_v19 }
 0x607   :  { %1100 = vmatprep.subr.bf16.mxu0 %v1987_v21  ;;  %v2035_v21 = vld [vmem:[#allocation10 + $0x10c] ss:$12 sps:$4 sm:$0xff]  }
 0x60a   :  { %1101 = vmatpush1.bf16.msra.mxu0 %v1985_v20 }
 0x60b   :  { %1102 = vmatprep.subr.bf16.mxu0 %v1990_v22  ;;  %v2036_v22 = vld [vmem:[#allocation10 + $0x110] ss:$12 sps:$4 sm:$0xff]  }
 0x60e   :  { %1103 = vmatpush1.bf16.msra.mxu0 %v1988_v23  ;;  %v2033_v23 = vld [vmem:[#allocation10 + $0x108] ss:$12 sps:$4 sm:$0xff]  }
 0x60f   :  { %1104 = vmatprep.subr.bf16.mxu0 %v1993_v24  ;;  %v2037_v24 = vld [vmem:[#allocation10 + $0x50] ss:$12 sps:$4 sm:$0xff]  }
 0x612   :  { %1105 = vmatpush1.bf16.msra.mxu0 %v1991_v25  ;;  %v2040_v25 = vld [vmem:[#allocation10 + $0x124] ss:$12 sps:$4 sm:$0xff]  }
 0x6b6   :  { %v832_v33 = vpop.f32.mrb[4].mxu1 }
 0x6b7   :  { %v833_v34 = vadd.f32 %v1661_v32, %v832_v33  ;;  %v1823_v35 = vpop.f32.mrb[5].mxu1 }
 0x6b8   :  { %v835_v36 = vpop.f32.mrb[6].mxu1  ;;  %v967_v35 = vld [vmem:[%s2464_s7 + $0x5] sm:$0x3] }
 0x6b9   :  { %838 = vst [vmem:[%s2466_s9] sm:$0xff] %v833_v34  ;;  %v1824_v37 = vpop.f32.mrb[7].mxu1  ;;  %v839_v38 = vmax.f32 %v833_v34, 0.0  ;;  %v1003_v36 = vrot.slane %v967_v35, %v2358_v15 }
 0x6ba   :  { %v1007_v37 = vrot.slane %v967_v35, %v2364_v17  ;;  %v2048_v35 = vld [vmem:[#allocation10 + $0x150] ss:$12 sps:$4 sm:$0xff]  }
 0x6bb   :  { %857 = vadd.xlane.f32.xlu0 %v839_v38 }
 0x748   :  { %v858_v42 = vpop.xlane.xlu0 %857 }
 0x749   :  { %v859_v43 = vmul.f32 0.25, %v858_v42 }
 0x74b   :  { %v860_v44 = vsub.f32 %v839_v38, %v859_v43  ;;  %v864_v51 = vmul.f32 %v859_v43, %v859_v43 }
 0x74d   :  { %v861_v45 = vmul.f32 %v860_v44, %v860_v44  ;;  %v865_v52 = vmul.f32 124.0, %v864_v51  ;;  %v2002_v51 = vld [vmem:[#allocation10 + $0x34] ss:$12 sps:$4 sm:$0xff]  }
 0x74f   :  { %862 = vadd.xlane.f32.xlu1 %v861_v45 }
 0x7dc   :  { %v863_v53 = vpop.xlane.xlu1 %862 }
 0x7dd   :  { %v866_v54 = vsub.f32 %v863_v53, %v865_v52  ;;  %v2021_v52 = vld [vmem:[#allocation10 + $0xc8] ss:$12 sps:$4 sm:$0xff]  }
 0x7de   :  { %v2022_v53 = vld [vmem:[#allocation10 + $0x8] ss:$12 sps:$4 sm:$0xff]   ;;  %1783 = vmatprep.subr.bf16.mxu0 %v2021_v52 }
 0x7df   :  { %v867_v55 = vmul.f32 0.25, %v866_v54  ;;  %v2000_v54 = vld [vmem:[#allocation10 + $0x30] ss:$12 sps:$4 sm:$0xff]   ;;  %v1133_v52 = vld [vmem:[%s2464_s7 + $0x7] sm:$0x7]  ;;  %s2180_s7 = scalar_lea.vmem %s1582_s12, 384 }
 0x7e0   :  { %p2181_p12 = scmp.ne.s32.totalorder %s1582_s12, %s2180_s7  ;;  %p2186_p0 = scmp.lt.s32.totalorder %s2180_s7, %s2180_s7 }
 0x7e1   :  { %v868_v56 = vadd.f32 1e-05, %v867_v55  ;;  %v2026_v55 = vld [vmem:[#allocation10 + $0xe0] ss:$12 sps:$4 sm:$0xff]  }
 0x7e2   :  { %p2187_p1 = por %p2186_p0, %p2185_p13 }
 0x7e3   :  { %2064 = vrsqrt.f32 %v868_v56  ;;  %v2005_v56 = vld [vmem:[#allocation10 + $0x4c] ss:$12 sps:$4 sm:$0xff]  }
 0x7e4   :  { %p2188_p2 = pnand %p2187_p1, %p2181_p12 }
 0x7ed   :  { %v2065_v57 = vpop.eup %2064 }
 0x7ee   :  { %v870_v58 = vmul.f32 %v2065_v57, %v860_v44  ;;  %v2027_v57 = vld [vmem:[#allocation10 + $0x20] ss:$12 sps:$4 sm:$0xff]  }
 0x7f0   :  { %v871_v59 = vpack.c.bf16 %v870_v58, %v870_v58  ;;  %v2031_v58 = vld [vmem:[#allocation10 + $0xf8] ss:$12 sps:$4 sm:$0xff]  }
 0x7f2   :  { %1842 = vmatmul.mubr.bf16.vlgmr.msra.gmra.mrb[8].mxu1 %v871_v59  ;;  %v2003_v59 = vld [vmem:[#allocation10 + $0x48] ss:$12 sps:$4 sm:$0xff]  }
 0x7f3   :  { %1492 = vmatpush1.bf16.msra.mxu1 %v1994_v47 }
 0x7f4   :  { %1493 = vmatprep.subr.bf16.mxu1 %v1999_v49 }
 0x7f7   :  { %1494 = vmatpush1.bf16.msra.mxu1 %v1997_v50 }
 0x7f8   :  { %1495 = vmatprep.subr.bf16.mxu1 %v2002_v51 }
 0x7fb   :  { %1496 = vmatpush1.bf16.msra.mxu1 %v2000_v54  ;;  %v1223_v54 = vrot.slane %v1133_v52, %v2358_v15 }
 0x7fc   :  { %1497 = vmatprep.subr.bf16.mxu1 %v2005_v56 }
 0x7ff   :  { %1498 = vmatpush1.bf16.msra.mxu1 %v2003_v59 }
 0x8c5   :  { %v960_v61 = vpop.f32.mrb[8].mxu1 }
 0x8c6   :  { %v961_v62 = vadd.f32 %v1670_v60, %v960_v61  ;;  %v1843_v63 = vpop.f32.mrb[9].mxu1  ;;  %v2008_v60 = vld [vmem:[#allocation10 + $0x64] ss:$12 sps:$4 sm:$0xff]  }
 0x8c7   :  { %v963_v0 = vpop.f32.mrb[10].mxu1  ;;  %v2032_v61 = vld [vmem:[#allocation10 + $0x38] ss:$12 sps:$4 sm:$0xff]   ;;  %1499 = vmatprep.subr.bf16.mxu1 %v2008_v60  ;;  %v2011_v63 = vld [vmem:[#allocation10 + $0x7c] ss:$12 sps:$4 sm:$0xff]  }
 0x8c8   :  { %v966_v1 = vmax.f32 %v961_v62, 0.0  ;;  %v1844_v2 = vpop.f32.mrb[11].mxu1  ;;  %v2006_v62 = vld [vmem:[#allocation10 + $0x60] ss:$12 sps:$4 sm:$0xff]   ;;  %v2009_v0 = vld [vmem:[#allocation10 + $0x78] ss:$12 sps:$4 sm:$0xff]  }
 0x8c9   :  { %1500 = vmatpush1.bf16.msra.mxu1 %v2006_v62  ;;  %v2012_v2 = vld [vmem:[#allocation10 + $0x90] ss:$12 sps:$4 sm:$0xff]  }
 0x8ca   :  { %984 = vadd.xlane.f32.xlu0 %v966_v1  ;;  %1501 = vmatprep.subr.bf16.mxu1 %v2011_v63 }
 0x8cd   :  { %1502 = vmatpush1.bf16.msra.mxu1 %v2009_v0 }
 0x957   :  { %v985_v9 = vpop.xlane.xlu0 %984 }
 0x958   :  { %v986_v10 = vmul.f32 0.009803922, %v985_v9  ;;  %v2030_v9 = vld [vmem:[#allocation10 + $0xf4] ss:$12 sps:$4 sm:$0xff]  }
 0x95a   :  { %v987_v11 = vsub.f32 %v966_v1, %v986_v10  ;;  %v991_v26 = vmul.f32 %v986_v10, %v986_v10  ;;  %v2014_v1 = vld [vmem:[#allocation10 + $0x94] ss:$12 sps:$4 sm:$0xff]   ;;  %v2028_v10 = vld [vmem:[#allocation10 + $0xf0] ss:$12 sps:$4 sm:$0xff]  }
 0x95b   :  { %1503 = vmatprep.subr.bf16.mxu1 %v2014_v1 }
 0x95c   :  { %v988_v12 = vmul.f32 %v987_v11, %v987_v11  ;;  %v992_v27 = vmul.f32 26.0, %v991_v26  ;;  %1504 = vmatpush1.bf16.msra.mxu1 %v2012_v2  ;;  %v2041_v26 = vld [vmem:[#allocation10 + $0x128] ss:$12 sps:$4 sm:$0xff]  }
 0x95d   :  { %1505 = vmatprep.subr.bf16.mxu1 %v2017_v3 }
 0x95e   :  { %989 = vadd.xlane.f32.xlu1 %v988_v12 }
 0x960   :  { %1506 = vmatpush1.bf16.msra.mxu1 %v2015_v4 }
 0x961   :  { %1507 = vmatprep.subr.bf16.mxu1 %v2020_v5 }
 0x964   :  { %1508 = vmatpush1.bf16.msra.mxu1 %v2018_v6 }
 0x965   :  { %1509 = vmatprep.subr.bf16.mxu1 %v2025_v7 }
 0x968   :  { %1510 = vmatpush1.bf16.msra.mxu1 %v2023_v8 }
 0x969   :  { %1511 = vmatprep.subr.bf16.mxu1 %v2030_v9 }
 0x96c   :  { %1512 = vmatpush1.bf16.msra.mxu1 %v2028_v10 }
 0x96d   :  { %1513 = vmatprep.subr.bf16.mxu1 %v2035_v21 }
 0x970   :  { %1514 = vmatpush1.bf16.msra.mxu1 %v2033_v23 }
 0x971   :  { %1515 = vmatprep.subr.bf16.mxu1 %v2040_v25 }
 0x9eb   :  { %v990_v28 = vpop.xlane.xlu1 %989 }
 0x9ec   :  { %v993_v29 = vsub.f32 %v990_v28, %v992_v27  ;;  %v2038_v27 = vld [vmem:[#allocation10 + $0x120] ss:$12 sps:$4 sm:$0xff]   ;;  %v2042_v28 = vld [vmem:[#allocation10 + $0x68] ss:$12 sps:$4 sm:$0xff]  }
 0x9ed   :  { %1516 = vmatpush1.bf16.msra.mxu1 %v2038_v27 }
 0x9ee   :  { %v994_v30 = vmul.f32 0.009803922, %v993_v29  ;;  %v2045_v29 = vld [vmem:[#allocation10 + $0x13c] ss:$12 sps:$4 sm:$0xff]  }
 0x9ef   :  { %1517 = vmatprep.subr.bf16.mxu1 %v2045_v29 }
 0x9f0   :  { %v995_v31 = vadd.f32 1e-05, %v994_v30  ;;  %v2046_v30 = vld [vmem:[#allocation10 + $0x140] ss:$12 sps:$4 sm:$0xff]  }
 0x9f2   :  { %2066 = vrsqrt.f32 %v995_v31  ;;  %v2043_v31 = vld [vmem:[#allocation10 + $0x138] ss:$12 sps:$4 sm:$0xff]  }
 0x9f3   :  { %1518 = vmatpush1.bf16.msra.mxu1 %v2043_v31 }
 0x9fc   :  { %v2067_v32 = vpop.eup %2066 }
 0x9fd   :  { %v997_v33 = vmul.f32 %v2067_v32, %v987_v11  ;;  %v2047_v32 = vld [vmem:[#allocation10 + $0x80] ss:$12 sps:$4 sm:$0xff]  }
 0x9ff   :  { %v998_v34 = vpack.c.bf16 %v997_v33, %v997_v33  ;;  %v2050_v33 = vld [vmem:[#allocation10 + $0x154] ss:$12 sps:$4 sm:$0xff]  }
 0xa00   :  { %1519 = vmatprep.subr.bf16.mxu1 %v2050_v33 }
 0xa01   :  { %1123 = vmatmul.mubr.bf16.vlgmr.msra.gmra.mrb[4].mxu0 %v998_v34  ;;  %v2051_v34 = vld [vmem:[#allocation10 + $0x158] ss:$12 sps:$4 sm:$0xff]   ;;  %1520 = vmatpush1.bf16.msra.mxu1 %v2048_v35 }
 0xa02   :  { %1784 = vmatpush3.bf16.msra.mxu0 %v2022_v53  ;;  %v1230_v53 = vsub.s32 2, %v2355_v14 }
 0xa03   :  { %1785 = vmatprep.subr.bf16.mxu0 %v2026_v55  ;;  %v1227_v55 = vrot.slane %v1133_v52, %v2364_v17 }
 0xa06   :  { %1786 = vmatpush3.bf16.msra.mxu0 %v2027_v57 }
 0xa07   :  { %1787 = vmatprep.subr.bf16.mxu0 %v2031_v58  ;;  %v1231_v58 = vrot.slane %v1133_v52, %v1230_v53 }
 0xa0a   :  { %1788 = vmatpush3.bf16.msra.mxu0 %v2032_v61 }
 0xa0b   :  { %1789 = vmatprep.subr.bf16.mxu0 %v2036_v22 }
 0xa0e   :  { %1790 = vmatpush3.bf16.msra.mxu0 %v2037_v24 }
 0xa0f   :  { %1791 = vmatprep.subr.bf16.mxu0 %v2041_v26 }
 0xa12   :  { %1792 = vmatpush3.bf16.msra.mxu0 %v2042_v28 }
 0xa13   :  { %1793 = vmatprep.subr.bf16.mxu0 %v2046_v30 }
 0xa16   :  { %1794 = vmatpush3.bf16.msra.mxu0 %v2047_v32 }
 0xa17   :  { %1795 = vmatprep.subr.bf16.mxu0 %v2051_v34 }
 0xad4   :  { %v1124_v38 = vpop.f32.mrb[4].mxu0 }
 0xad5   :  { %v2429_v39 = vadd.f32 %v1124_v38, %v1003_v36  ;;  %v1126_v40 = vpop.f32.mrb[5].mxu0  ;;  %v2052_v36 = vld [vmem:[#allocation10 + $0x98] ss:$12 sps:$4 sm:$0xff]   ;;  %v2056_v38 = vld [vmem:[#allocation10 + $0x170] ss:$12 sps:$4 sm:$0xff]  }
 0xad6   :  { %v2431_v41 = vadd.f32 %v1126_v40, %v1007_v37  ;;  %v1128_v42 = vpop.f32.mrb[6].mxu0  ;;  %v2055_v37 = vld [vmem:[#allocation10 + $0x16c] ss:$12 sps:$4 sm:$0xff]   ;;  %1796 = vmatpush3.bf16.msra.mxu0 %v2052_v36  ;;  %v2057_v40 = vld [vmem:[#allocation10 + $0xb0] ss:$12 sps:$4 sm:$0xff]  }
 0xad7   :  { %v1131_v43 = vmax.f32 %v2429_v39, 0.0  ;;  %v1129_v44 = vpop.f32.mrb[7].mxu0  ;;  %v2053_v39 = vld [vmem:[#allocation10 + $0x168] ss:$12 sps:$4 sm:$0xff]   ;;  %1521 = vmatprep.subr.bf16.mxu1 %v2055_v37  ;;  %1797 = vmatprep.subr.bf16.mxu0 %v2056_v38 }
 0xad8   :  { %v1132_v45 = vmax.f32 %v2431_v41, 0.0  ;;  %1522 = vmatpush1.bf16.msra.mxu1 %v2053_v39 }
 0xada   :  { %v1198_v46 = vadd.f32 %v1132_v45, %v1131_v43  ;;  %1798 = vmatpush3.bf16.msra.mxu0 %v2057_v40 }
 0xadc   :  { %1199 = vadd.xlane.f32.xlu0 %v1198_v46 }
 0xb69   :  { %v1200_v11 = vpop.xlane.xlu0 %1199 }
 0xb6a   :  { %v1201_v12 = vmul.f32 0.0049751243, %v1200_v11 }
 0xb6c   :  { %v1202_v13 = vsub.f32 %v1131_v43, %v1201_v12  ;;  %v1203_v16 = vsub.f32 %v1132_v45, %v1201_v12  ;;  %v1209_v41 = vmul.f32 %v1201_v12, %v1201_v12 }
 0xb6e   :  { %v1204_v18 = vmul.f32 %v1202_v13, %v1202_v13  ;;  %v1205_v19 = vmul.f32 %v1203_v16, %v1203_v16  ;;  %v1210_v42 = vmul.f32 55.0, %v1209_v41 }
 0xb70   :  { %v1206_v20 = vadd.f32 %v1205_v19, %v1204_v18 }
 0xb72   :  { %1207 = vadd.xlane.f32.xlu1 %v1206_v20 }
 0xbff   :  { %v1208_v43 = vpop.xlane.xlu1 %1207 }
 0xc00   :  { %v1211_v44 = vsub.f32 %v1208_v43, %v1210_v42 }
 0xc02   :  { %v1212_v45 = vmul.f32 0.0049751243, %v1211_v44 }
 0xc04   :  { %v1213_v46 = vadd.f32 1e-05, %v1212_v45 }
 0xc06   :  { %2068 = vrsqrt.f32 %v1213_v46 }
 0xc10   :  { %v2069_v47 = vpop.eup %2068 }
 0xc11   :  { %v1216_v48 = vmul.f32 %v2069_v47, %v1203_v16  ;;  %v1215_v49 = vmul.f32 %v2069_v47, %v1202_v13 }
 0xc13   :  { %v1218_v50 = vpack.c.bf16 %v1216_v48, %v1216_v48  ;;  %v1217_v51 = vpack.c.bf16 %v1215_v49, %v1215_v49 }
 0xc15   :  { %1523 = vmatprep.mubr.bf16.mxu1 %v1218_v50  ;;  %1564 = vmatprep.mubr.bf16.mxu0 %v1218_v50 }
 0xc16   :  { %1524 = vmatmul.mubr.bf16.vlgmr.msra.gmra.mrb[12].mxu1 %v1217_v51  ;;  %1565 = vmatmul.mubr.bf16.vlgmr.msra.gmra.mrb[8].mxu0 %v1217_v51 }
 0xce9   :  { %v1525_v56 = vpop.f32.mrb[12].mxu1  ;;  %v1799_v57 = vpop.f32.mrb[8].mxu0 }
 0xcea   :  { %v1526_v59 = vadd.f32 %v1525_v56, %v1223_v54  ;;  %v1527_v60 = vpop.f32.mrb[13].mxu1  ;;  %v1800_v61 = vpop.f32.mrb[9].mxu0 }
 0xceb   :  { %v1528_v62 = vadd.f32 %v1527_v60, %v1227_v55  ;;  %v1801_v63 = vadd.f32 %v1800_v61, %v1799_v57  ;;  %v1529_v0 = vpop.f32.mrb[14].mxu1  ;;  %v1802_v1 = vpop.f32.mrb[10].mxu0 }
 0xcec   :  { %1572 = vst [vmem:[#allocation11] sm:$0xff] %v1526_v59  ;;  %v1530_v2 = vpop.f32.mrb[15].mxu1  ;;  %v1803_v3 = vpop.f32.mrb[11].mxu0 }
 0xced   :  { %1573 = vst [vmem:[#allocation11 + $0x8] sm:$0xff] %v1528_v62  ;;  %v1567_v14 = vadd.f32 %v1801_v63, %v1231_v58 }
 0xcef   :  { %1574 = vst [vmem:[#allocation11 + $0x10] sm:$0xff] %v1567_v14 }
 0xcf0   :  { %2191 = shalt.err (!%p2188_p2)
}
 0xcf1   :  { %s2192_s21 = scalar_lea.hbm %s2465_s8, 384 }
 0xcf2   :  { %p2193_p3 = scmp.ne.s32.totalorder %s2465_s8, %s2192_s21  ;;  %p2196_p4 = scmp.lt.u32.totalorder %s2192_s21, %s2465_s8 }
 0xcf4   :  { %p2198_p5 = pnand %p2196_p4, %p2193_p3 }
 0xcf6   :  { %2201 = shalt.err (!%p2198_p5)
}
 0xcf7   :  { %1584 = dma.vmem_to_hbm [thread:$0]  %s1582_s12, 384, %s2465_s8, [#allocation4]  }
 0xcf8   :  { %2208 = dma.done.wait [#allocation4], 384  }
 0xcf9   :  { %2209 = vsyncadd [#allocation4], 4294966912 }
 0xcfa   :  { %1592 = vsyncpa [#allocation3], 1 }
 0xcfb   :  { %1593 = vsyncpa [#allocation6], 1 }
 0xcfc   :  { %1594 = vsyncpa [#allocation9], 1 }
 0xcfd   :  { %1595 = vsyncpa [#allocation4], 1 }

</bundles_post_ra>
